<compile_context>
chip_gen: v6e
topology: v6e:2x2x1
jax: 0.10.0
libtpu: 0.0.40
codegen_flags: <defaults>
</compile_context>

<pallas_src>
import jax
import jax.numpy as jnp
from jax.experimental import pallas as pl
from jax.experimental.pallas import tpu as pltpu


# ----------------------------------------------------------------------------
# Pallas kernel: embedding+input projection (one-hot MXU), GRU recurrence,
# final Linear + Sigmoid.
# ----------------------------------------------------------------------------
def gru_kernel(
    tok_ref,    # (T*Bp, 1) int32  tokens, time-major, batch padded to Bp
    m_ref,      # (Vp, 3*Hp)       fused Emb@Wih per token  [r | z | n];
                #                  row Vp-1 holds the folded biases
    whh_ref,    # (Hp, 3*Hp)       fused hidden->gate weights [r | z | n]
    bhn_ref,    # (1, Hp)          hidden bias of the n-gate (stays inside r*(.))
    h0_ref,     # (Bp, Hp)         initial hidden (padded)
    wlin_ref,   # (Hp, OUTP)       final linear weight (padded to 128 lanes)
    blin_ref,   # (1, OUTP)        final linear bias (padded)
    out_ref,    # (Bp, OUTP)       sigmoid(linear(h_T))  (padded)
    hout_ref,   # (Bp, Hp)         final hidden (padded)
):
    Bp, Hp = h0_ref.shape
    TB = tok_ref.shape[0]
    T = TB // Bp
    Vp = m_ref.shape[0]

    # --- Embedding lookup + input projection + bias, all as ONE MXU matmul:
    #     one-hot over Vp lanes; lane Vp-1 is always on and selects the bias row.
    lane = jax.lax.broadcasted_iota(jnp.int32, (TB, Vp), 1)
    onehot = jnp.logical_or(lane == tok_ref[...],
                            lane == (Vp - 1)).astype(jnp.float32)     # (TB, Vp)
    gi = jnp.dot(onehot, m_ref[...],
                 preferred_element_type=jnp.float32)                  # (TB, 3*Hp)

    # --- Hoisted loop invariants (weights + pre-broadcast bias).
    whh = whh_ref[...]                                                # (Hp, 3*Hp)
    bhn = jnp.broadcast_to(bhn_ref[...], (Bp, Hp))                    # broadcast once

    # --- Serial recurrence, fully unrolled (T is a static trace-time int).
    #     One MXU push per step; gate slices are 128-lane tile aligned.
    h = h0_ref[...]
    for t in range(T):
        gi_t = gi[t * Bp:(t + 1) * Bp, :]                             # static, 8-row aligned
        gh = jnp.dot(h, whh, preferred_element_type=jnp.float32)      # (Bp, 3*Hp)
        r = jax.nn.sigmoid(gi_t[:, 0 * Hp:1 * Hp] + gh[:, 0 * Hp:1 * Hp])
        z = jax.nn.sigmoid(gi_t[:, 1 * Hp:2 * Hp] + gh[:, 1 * Hp:2 * Hp])
        n = jnp.tanh(gi_t[:, 2 * Hp:3 * Hp] + r * (gh[:, 2 * Hp:3 * Hp] + bhn))
        h = (1.0 - z) * n + z * h

    hout_ref[...] = h
    logits = (jnp.dot(h, wlin_ref[...], preferred_element_type=jnp.float32)
              + blin_ref[...])                                        # (Bp, OUTP) lane-dense
    out_ref[...] = jax.nn.sigmoid(logits)


# ----------------------------------------------------------------------------
# Wrapper: token reshaping, weight fusing/folding/padding, pallas_call, un-pad
# ----------------------------------------------------------------------------
@jax.jit
def gru_model_forward(tokens, h, params):
    """tokens: (B, T) int32; h: (1, B, H) float32. Returns (sigmoid_out, h_new)."""
    emb = params["embedding"]            # (vocab, D), row 0 == 0 (padding_idx)
    w_ih = params["w_ih"]                # (3H, D)   PyTorch layout
    w_hh = params["w_hh"]                # (3H, H)
    b_ih = params["b_ih"]                # (3H,)
    b_hh = params["b_hh"]                # (3H,)
    w_lin = params["w_lin"]              # (2, H)
    b_lin = params["b_lin"]              # (2,)

    B, T = tokens.shape
    H = w_hh.shape[1]
    D = w_ih.shape[1]
    V = emb.shape[0]

    Hp = 128                             # per-gate lane padding (full vreg lanes)
    Bp = max(8, ((B + 7) // 8) * 8)      # sublane-aligned batch
    OUTP = 128                           # lane-dense logits output
    Vp = ((V + 1 + 127) // 128) * 128    # one-hot lanes; lane Vp-1 reserved for bias

    # --- Only int32 data prep per call: time-major, batch-padded token plane.
    tok_tm = jnp.transpose(tokens, (1, 0)).astype(jnp.int32)           # (T, B)
    tok_pad = jnp.zeros((T, Bp), jnp.int32).at[:, :B].set(tok_tm)      # pads hit row 0 (zeros)
    tok_flat = tok_pad.reshape(T * Bp, 1)

    # --- Fused + lane-padded gate weights (weight-only prep, cheap under jit).
    wih_f = jnp.zeros((D, 3 * Hp), jnp.float32)
    whh_f = jnp.zeros((Hp, 3 * Hp), jnp.float32)
    for g in range(3):
        wih_f = wih_f.at[:, g * Hp:g * Hp + H].set(w_ih[g * H:(g + 1) * H, :].T)
        whh_f = whh_f.at[:H, g * Hp:g * Hp + H].set(w_hh[g * H:(g + 1) * H, :].T)

    # --- Fold embedding into the input projection: M[v] = Emb[v] @ Wih_fused.
    #     Row Vp-1 holds the foldable biases [b_ir+b_hr | b_iz+b_hz | b_in]
    #     (b_hn must stay inside the r*(h@Whn + b_hn) term per PyTorch semantics).
    m_aug = jnp.zeros((Vp, 3 * Hp), jnp.float32)
    m_aug = m_aug.at[:V, :].set(
        jnp.dot(emb, wih_f, precision=jax.lax.Precision.HIGHEST))
    bi_f = jnp.zeros((3 * Hp,), jnp.float32)
    bi_f = bi_f.at[0 * Hp:0 * Hp + H].set(b_ih[0 * H:1 * H] + b_hh[0 * H:1 * H])
    bi_f = bi_f.at[1 * Hp:1 * Hp + H].set(b_ih[1 * H:2 * H] + b_hh[1 * H:2 * H])
    bi_f = bi_f.at[2 * Hp:2 * Hp + H].set(b_ih[2 * H:3 * H])
    m_aug = m_aug.at[Vp - 1, :].set(bi_f)

    bhn = jnp.zeros((1, Hp), jnp.float32).at[0, :H].set(b_hh[2 * H:3 * H])
    h0_pad = jnp.zeros((Bp, Hp), jnp.float32).at[:B, :H].set(h[0])
    wlin_p = jnp.zeros((Hp, OUTP), jnp.float32).at[:H, :2].set(w_lin.T)
    blin_p = jnp.zeros((1, OUTP), jnp.float32).at[0, :2].set(b_lin)

    vmem = pl.BlockSpec(memory_space=pltpu.MemorySpace.VMEM)
    out_p, h_final_p = pl.pallas_call(
        gru_kernel,
        out_shape=(
            jax.ShapeDtypeStruct((Bp, OUTP), jnp.float32),
            jax.ShapeDtypeStruct((Bp, Hp), jnp.float32),
        ),
        in_specs=[vmem] * 7,
        out_specs=(vmem, vmem),
    )(tok_flat, m_aug, whh_f, bhn, h0_pad, wlin_p, blin_p)

    out = out_p[:B, :2]
    h_new = h_final_p[:B, :H][None, :, :]                  # back to (1, B, H)
    return out, h_new


# ----------------------------------------------------------------------------
# Deterministic parameter construction (mirrors nn.Module __init__ shapes)
# ----------------------------------------------------------------------------
def make_params(key, vocab_size, input_dim, hidden_dim):
    ks = jax.random.split(key, 7)
    # Embedding(vocab, input_dim, padding_idx=0): N(0,1), row 0 zeroed.
    emb = jax.random.normal(ks[0], (vocab_size, input_dim), jnp.float32)
    emb = emb.at[0].set(0.0)
    # GRU weights: U(-1/sqrt(H), 1/sqrt(H))
    s = 1.0 / jnp.sqrt(hidden_dim)
    w_ih = jax.random.uniform(ks[1], (3 * hidden_dim, input_dim), jnp.float32, -s, s)
    w_hh = jax.random.uniform(ks[2], (3 * hidden_dim, hidden_dim), jnp.float32, -s, s)
    b_ih = jax.random.uniform(ks[3], (3 * hidden_dim,), jnp.float32, -s, s)
    b_hh = jax.random.uniform(ks[4], (3 * hidden_dim,), jnp.float32, -s, s)
    # Linear(hidden, 2): U(-1/sqrt(H), 1/sqrt(H))
    w_lin = jax.random.uniform(ks[5], (2, hidden_dim), jnp.float32, -s, s)
    b_lin = jax.random.uniform(ks[6], (2,), jnp.float32, -s, s)
    return dict(embedding=emb, w_ih=w_ih, w_hh=w_hh, b_ih=b_ih, b_hh=b_hh,
                w_lin=w_lin, b_lin=b_lin)


# Pure-JAX reference (mirrors torch.nn.GRU math) for a sanity check.
def reference_forward(tokens, h, params):
    emb = params["embedding"]
    H = params["w_hh"].shape[1]
    x = jnp.take(emb, tokens, axis=0)                 # (B, T, D)
    w_ih, w_hh, b_ih, b_hh = (params["w_ih"], params["w_hh"],
                              params["b_ih"], params["b_hh"])
    h_t = h[0]
    for t in range(tokens.shape[1]):
        x_t = x[:, t]
        gi = x_t @ w_ih.T + b_ih
        gh = h_t @ w_hh.T + b_hh
        i_r, i_z, i_n = gi[:, :H], gi[:, H:2 * H], gi[:, 2 * H:]
        h_r, h_z, h_n = gh[:, :H], gh[:, H:2 * H], gh[:, 2 * H:]
        r = jax.nn.sigmoid(i_r + h_r)
        z = jax.nn.sigmoid(i_z + h_z)
        n = jnp.tanh(i_n + r * h_n)
        h_t = (1.0 - z) * n + z * h_t
    out = jax.nn.sigmoid(h_t @ params["w_lin"].T + params["b_lin"])
    return out, h_t[None]


if __name__ == "__main__":
    # Small shapes consistent with the module's forward.
    vocab_size, input_dim, hidden_dim, n_layers = 20, 16, 32, 1
    batch, seq = 2, 8

    key = jax.random.PRNGKey(0)
    pkey, xkey = jax.random.split(key)
    params = make_params(pkey, vocab_size, input_dim, hidden_dim)

    tokens = jax.random.randint(xkey, (batch, seq), 0, vocab_size, jnp.int32)
    h0 = jnp.zeros((n_layers, batch, hidden_dim), jnp.float32)  # init_hidden

    out, h_new = gru_model_forward(tokens, h0, params)
    out, h_new = jax.block_until_ready(out), jax.block_until_ready(h_new)

    ref_out, ref_h = reference_forward(tokens, h0, params)
    assert out.shape == (batch, 2) and h_new.shape == (n_layers, batch, hidden_dim)
    assert jnp.allclose(out, ref_out, atol=1e-5), "output mismatch vs reference"
    assert jnp.allclose(h_new, ref_h, atol=1e-5), "hidden mismatch vs reference"

    print("KERNEL_OK")
</pallas_src>

<mosaic_0001>
module attributes {stable_mosaic.version = 11 : i64} {
  func.func @gru_kernel(%arg0: memref<64x1xi32, #tpu.memory_space<vmem>>, %arg1: memref<128x384xf32, #tpu.memory_space<vmem>>, %arg2: memref<128x384xf32, #tpu.memory_space<vmem>>, %arg3: memref<1x128xf32, #tpu.memory_space<vmem>>, %arg4: memref<8x128xf32, #tpu.memory_space<vmem>>, %arg5: memref<128x128xf32, #tpu.memory_space<vmem>>, %arg6: memref<1x128xf32, #tpu.memory_space<vmem>>, %arg7: memref<8x128xf32, #tpu.memory_space<vmem>>, %arg8: memref<8x128xf32, #tpu.memory_space<vmem>>) attributes {dimension_semantics = [], scalar_prefetch = 0 : i64, scratch_operands = 0 : i64, tpu.core_type = #tpu.core_type<tc>} {
    %0 = tpu.iota {dimensions = array<i32: 1>} : vector<64x128xi32>
    %c0 = arith.constant 0 : index
    %c0_0 = arith.constant 0 : index
    %1 = vector.load %arg0[%c0, %c0_0] : memref<64x1xi32, #tpu.memory_space<vmem>>, vector<64x1xi32>
    %2 = vector.broadcast %1 : vector<64x1xi32> to vector<64x128xi32>
    %3 = arith.cmpi eq, %0, %2 : vector<64x128xi32>
    %c127_i32 = arith.constant 127 : i32
    %4 = vector.broadcast %c127_i32 : i32 to vector<64x128xi32>
    %5 = arith.cmpi eq, %0, %4 : vector<64x128xi32>
    %6 = arith.ori %3, %5 : vector<64x128xi1>
    %7 = arith.extui %6 : vector<64x128xi1> to vector<64x128xi32>
    %8 = arith.sitofp %7 : vector<64x128xi32> to vector<64x128xf32>
    %c0_1 = arith.constant 0 : index
    %c0_2 = arith.constant 0 : index
    %9 = vector.load %arg1[%c0_1, %c0_2] : memref<128x384xf32, #tpu.memory_space<vmem>>, vector<128x384xf32>
    %cst = arith.constant dense<0.000000e+00> : vector<64x384xf32>
    %10 = tpu.matmul %8, %9, %cst {dimension_numbers = #tpu.dot_dimension_numbers<[1], [0], [0], [1], [0, 0, 1, 1], [], []>} : vector<64x128xf32>, vector<128x384xf32>, vector<64x384xf32> -> vector<64x384xf32>
    %c0_3 = arith.constant 0 : index
    %c0_4 = arith.constant 0 : index
    %11 = vector.load %arg2[%c0_3, %c0_4] : memref<128x384xf32, #tpu.memory_space<vmem>>, vector<128x384xf32>
    %c0_5 = arith.constant 0 : index
    %c0_6 = arith.constant 0 : index
    %12 = vector.load %arg3[%c0_5, %c0_6] : memref<1x128xf32, #tpu.memory_space<vmem>>, vector<1x128xf32>
    %13 = vector.shape_cast %12 : vector<1x128xf32> to vector<1x128xf32>
    %14 = vector.broadcast %13 : vector<1x128xf32> to vector<8x128xf32>
    %c0_7 = arith.constant 0 : index
    %c0_8 = arith.constant 0 : index
    %15 = vector.load %arg4[%c0_7, %c0_8] : memref<8x128xf32, #tpu.memory_space<vmem>>, vector<8x128xf32>
    %16 = vector.extract_strided_slice %10 {offsets = [0, 0], sizes = [8, 384], strides = [1, 1]} : vector<64x384xf32> to vector<8x384xf32>
    %cst_9 = arith.constant dense<0.000000e+00> : vector<8x384xf32>
    %17 = tpu.matmul %15, %11, %cst_9 {dimension_numbers = #tpu.dot_dimension_numbers<[1], [0], [0], [1], [0, 0, 1, 1], [], []>} : vector<8x128xf32>, vector<128x384xf32>, vector<8x384xf32> -> vector<8x384xf32>
    %18 = vector.extract_strided_slice %16 {offsets = [0, 0], sizes = [8, 128], strides = [1, 1]} : vector<8x384xf32> to vector<8x128xf32>
    %19 = vector.extract_strided_slice %17 {offsets = [0, 0], sizes = [8, 128], strides = [1, 1]} : vector<8x384xf32> to vector<8x128xf32>
    %20 = arith.addf %18, %19 : vector<8x128xf32>
    %21 = arith.negf %20 : vector<8x128xf32>
    %22 = math.exp %21 : vector<8x128xf32>
    %cst_10 = arith.constant 1.000000e+00 : f32
    %23 = vector.broadcast %cst_10 : f32 to vector<8x128xf32>
    %24 = arith.addf %23, %22 : vector<8x128xf32>
    %25 = arith.divf %23, %24 : vector<8x128xf32>
    %26 = vector.extract_strided_slice %16 {offsets = [0, 128], sizes = [8, 128], strides = [1, 1]} : vector<8x384xf32> to vector<8x128xf32>
    %27 = vector.extract_strided_slice %17 {offsets = [0, 128], sizes = [8, 128], strides = [1, 1]} : vector<8x384xf32> to vector<8x128xf32>
    %28 = arith.addf %26, %27 : vector<8x128xf32>
    %29 = arith.negf %28 : vector<8x128xf32>
    %30 = math.exp %29 : vector<8x128xf32>
    %cst_11 = arith.constant 1.000000e+00 : f32
    %31 = vector.broadcast %cst_11 : f32 to vector<8x128xf32>
    %32 = arith.addf %31, %30 : vector<8x128xf32>
    %33 = arith.divf %31, %32 : vector<8x128xf32>
    %34 = vector.extract_strided_slice %16 {offsets = [0, 256], sizes = [8, 128], strides = [1, 1]} : vector<8x384xf32> to vector<8x128xf32>
    %35 = vector.extract_strided_slice %17 {offsets = [0, 256], sizes = [8, 128], strides = [1, 1]} : vector<8x384xf32> to vector<8x128xf32>
    %36 = arith.addf %35, %14 : vector<8x128xf32>
    %37 = arith.mulf %25, %36 : vector<8x128xf32>
    %38 = arith.addf %34, %37 : vector<8x128xf32>
    %39 = math.tanh %38 : vector<8x128xf32>
    %cst_12 = arith.constant 1.000000e+00 : f32
    %40 = vector.broadcast %cst_12 : f32 to vector<8x128xf32>
    %41 = arith.subf %40, %33 : vector<8x128xf32>
    %42 = arith.mulf %41, %39 : vector<8x128xf32>
    %43 = arith.mulf %33, %15 : vector<8x128xf32>
    %44 = arith.addf %42, %43 : vector<8x128xf32>
    %45 = vector.extract_strided_slice %10 {offsets = [8, 0], sizes = [8, 384], strides = [1, 1]} : vector<64x384xf32> to vector<8x384xf32>
    %cst_13 = arith.constant dense<0.000000e+00> : vector<8x384xf32>
    %46 = tpu.matmul %44, %11, %cst_13 {dimension_numbers = #tpu.dot_dimension_numbers<[1], [0], [0], [1], [0, 0, 1, 1], [], []>} : vector<8x128xf32>, vector<128x384xf32>, vector<8x384xf32> -> vector<8x384xf32>
    %47 = vector.extract_strided_slice %45 {offsets = [0, 0], sizes = [8, 128], strides = [1, 1]} : vector<8x384xf32> to vector<8x128xf32>
    %48 = vector.extract_strided_slice %46 {offsets = [0, 0], sizes = [8, 128], strides = [1, 1]} : vector<8x384xf32> to vector<8x128xf32>
    %49 = arith.addf %47, %48 : vector<8x128xf32>
    %50 = arith.negf %49 : vector<8x128xf32>
    %51 = math.exp %50 : vector<8x128xf32>
    %cst_14 = arith.constant 1.000000e+00 : f32
    %52 = vector.broadcast %cst_14 : f32 to vector<8x128xf32>
    %53 = arith.addf %52, %51 : vector<8x128xf32>
    %54 = arith.divf %52, %53 : vector<8x128xf32>
    %55 = vector.extract_strided_slice %45 {offsets = [0, 128], sizes = [8, 128], strides = [1, 1]} : vector<8x384xf32> to vector<8x128xf32>
    %56 = vector.extract_strided_slice %46 {offsets = [0, 128], sizes = [8, 128], strides = [1, 1]} : vector<8x384xf32> to vector<8x128xf32>
    %57 = arith.addf %55, %56 : vector<8x128xf32>
    %58 = arith.negf %57 : vector<8x128xf32>
    %59 = math.exp %58 : vector<8x128xf32>
    %cst_15 = arith.constant 1.000000e+00 : f32
    %60 = vector.broadcast %cst_15 : f32 to vector<8x128xf32>
    %61 = arith.addf %60, %59 : vector<8x128xf32>
    %62 = arith.divf %60, %61 : vector<8x128xf32>
    %63 = vector.extract_strided_slice %45 {offsets = [0, 256], sizes = [8, 128], strides = [1, 1]} : vector<8x384xf32> to vector<8x128xf32>
    %64 = vector.extract_strided_slice %46 {offsets = [0, 256], sizes = [8, 128], strides = [1, 1]} : vector<8x384xf32> to vector<8x128xf32>
    %65 = arith.addf %64, %14 : vector<8x128xf32>
    %66 = arith.mulf %54, %65 : vector<8x128xf32>
    %67 = arith.addf %63, %66 : vector<8x128xf32>
    %68 = math.tanh %67 : vector<8x128xf32>
    %cst_16 = arith.constant 1.000000e+00 : f32
    %69 = vector.broadcast %cst_16 : f32 to vector<8x128xf32>
    %70 = arith.subf %69, %62 : vector<8x128xf32>
    %71 = arith.mulf %70, %68 : vector<8x128xf32>
    %72 = arith.mulf %62, %44 : vector<8x128xf32>
    %73 = arith.addf %71, %72 : vector<8x128xf32>
    %74 = vector.extract_strided_slice %10 {offsets = [16, 0], sizes = [8, 384], strides = [1, 1]} : vector<64x384xf32> to vector<8x384xf32>
    %cst_17 = arith.constant dense<0.000000e+00> : vector<8x384xf32>
    %75 = tpu.matmul %73, %11, %cst_17 {dimension_numbers = #tpu.dot_dimension_numbers<[1], [0], [0], [1], [0, 0, 1, 1], [], []>} : vector<8x128xf32>, vector<128x384xf32>, vector<8x384xf32> -> vector<8x384xf32>
    %76 = vector.extract_strided_slice %74 {offsets = [0, 0], sizes = [8, 128], strides = [1, 1]} : vector<8x384xf32> to vector<8x128xf32>
    %77 = vector.extract_strided_slice %75 {offsets = [0, 0], sizes = [8, 128], strides = [1, 1]} : vector<8x384xf32> to vector<8x128xf32>
    %78 = arith.addf %76, %77 : vector<8x128xf32>
    %79 = arith.negf %78 : vector<8x128xf32>
    %80 = math.exp %79 : vector<8x128xf32>
    %cst_18 = arith.constant 1.000000e+00 : f32
    %81 = vector.broadcast %cst_18 : f32 to vector<8x128xf32>
    %82 = arith.addf %81, %80 : vector<8x128xf32>
    %83 = arith.divf %81, %82 : vector<8x128xf32>
    %84 = vector.extract_strided_slice %74 {offsets = [0, 128], sizes = [8, 128], strides = [1, 1]} : vector<8x384xf32> to vector<8x128xf32>
    %85 = vector.extract_strided_slice %75 {offsets = [0, 128], sizes = [8, 128], strides = [1, 1]} : vector<8x384xf32> to vector<8x128xf32>
    %86 = arith.addf %84, %85 : vector<8x128xf32>
    %87 = arith.negf %86 : vector<8x128xf32>
    %88 = math.exp %87 : vector<8x128xf32>
    %cst_19 = arith.constant 1.000000e+00 : f32
    %89 = vector.broadcast %cst_19 : f32 to vector<8x128xf32>
    %90 = arith.addf %89, %88 : vector<8x128xf32>
    %91 = arith.divf %89, %90 : vector<8x128xf32>
    %92 = vector.extract_strided_slice %74 {offsets = [0, 256], sizes = [8, 128], strides = [1, 1]} : vector<8x384xf32> to vector<8x128xf32>
    %93 = vector.extract_strided_slice %75 {offsets = [0, 256], sizes = [8, 128], strides = [1, 1]} : vector<8x384xf32> to vector<8x128xf32>
    %94 = arith.addf %93, %14 : vector<8x128xf32>
    %95 = arith.mulf %83, %94 : vector<8x128xf32>
    %96 = arith.addf %92, %95 : vector<8x128xf32>
    %97 = math.tanh %96 : vector<8x128xf32>
    %cst_20 = arith.constant 1.000000e+00 : f32
    %98 = vector.broadcast %cst_20 : f32 to vector<8x128xf32>
    %99 = arith.subf %98, %91 : vector<8x128xf32>
    %100 = arith.mulf %99, %97 : vector<8x128xf32>
    %101 = arith.mulf %91, %73 : vector<8x128xf32>
    %102 = arith.addf %100, %101 : vector<8x128xf32>
    %103 = vector.extract_strided_slice %10 {offsets = [24, 0], sizes = [8, 384], strides = [1, 1]} : vector<64x384xf32> to vector<8x384xf32>
    %cst_21 = arith.constant dense<0.000000e+00> : vector<8x384xf32>
    %104 = tpu.matmul %102, %11, %cst_21 {dimension_numbers = #tpu.dot_dimension_numbers<[1], [0], [0], [1], [0, 0, 1, 1], [], []>} : vector<8x128xf32>, vector<128x384xf32>, vector<8x384xf32> -> vector<8x384xf32>
    %105 = vector.extract_strided_slice %103 {offsets = [0, 0], sizes = [8, 128], strides = [1, 1]} : vector<8x384xf32> to vector<8x128xf32>
    %106 = vector.extract_strided_slice %104 {offsets = [0, 0], sizes = [8, 128], strides = [1, 1]} : vector<8x384xf32> to vector<8x128xf32>
    %107 = arith.addf %105, %106 : vector<8x128xf32>
    %108 = arith.negf %107 : vector<8x128xf32>
    %109 = math.exp %108 : vector<8x128xf32>
    %cst_22 = arith.constant 1.000000e+00 : f32
    %110 = vector.broadcast %cst_22 : f32 to vector<8x128xf32>
    %111 = arith.addf %110, %109 : vector<8x128xf32>
    %112 = arith.divf %110, %111 : vector<8x128xf32>
    %113 = vector.extract_strided_slice %103 {offsets = [0, 128], sizes = [8, 128], strides = [1, 1]} : vector<8x384xf32> to vector<8x128xf32>
    %114 = vector.extract_strided_slice %104 {offsets = [0, 128], sizes = [8, 128], strides = [1, 1]} : vector<8x384xf32> to vector<8x128xf32>
    %115 = arith.addf %113, %114 : vector<8x128xf32>
    %116 = arith.negf %115 : vector<8x128xf32>
    %117 = math.exp %116 : vector<8x128xf32>
    %cst_23 = arith.constant 1.000000e+00 : f32
    %118 = vector.broadcast %cst_23 : f32 to vector<8x128xf32>
    %119 = arith.addf %118, %117 : vector<8x128xf32>
    %120 = arith.divf %118, %119 : vector<8x128xf32>
    %121 = vector.extract_strided_slice %103 {offsets = [0, 256], sizes = [8, 128], strides = [1, 1]} : vector<8x384xf32> to vector<8x128xf32>
    %122 = vector.extract_strided_slice %104 {offsets = [0, 256], sizes = [8, 128], strides = [1, 1]} : vector<8x384xf32> to vector<8x128xf32>
    %123 = arith.addf %122, %14 : vector<8x128xf32>
    %124 = arith.mulf %112, %123 : vector<8x128xf32>
    %125 = arith.addf %121, %124 : vector<8x128xf32>
    %126 = math.tanh %125 : vector<8x128xf32>
    %cst_24 = arith.constant 1.000000e+00 : f32
    %127 = vector.broadcast %cst_24 : f32 to vector<8x128xf32>
    %128 = arith.subf %127, %120 : vector<8x128xf32>
    %129 = arith.mulf %128, %126 : vector<8x128xf32>
    %130 = arith.mulf %120, %102 : vector<8x128xf32>
    %131 = arith.addf %129, %130 : vector<8x128xf32>
    %132 = vector.extract_strided_slice %10 {offsets = [32, 0], sizes = [8, 384], strides = [1, 1]} : vector<64x384xf32> to vector<8x384xf32>
    %cst_25 = arith.constant dense<0.000000e+00> : vector<8x384xf32>
    %133 = tpu.matmul %131, %11, %cst_25 {dimension_numbers = #tpu.dot_dimension_numbers<[1], [0], [0], [1], [0, 0, 1, 1], [], []>} : vector<8x128xf32>, vector<128x384xf32>, vector<8x384xf32> -> vector<8x384xf32>
    %134 = vector.extract_strided_slice %132 {offsets = [0, 0], sizes = [8, 128], strides = [1, 1]} : vector<8x384xf32> to vector<8x128xf32>
    %135 = vector.extract_strided_slice %133 {offsets = [0, 0], sizes = [8, 128], strides = [1, 1]} : vector<8x384xf32> to vector<8x128xf32>
    %136 = arith.addf %134, %135 : vector<8x128xf32>
    %137 = arith.negf %136 : vector<8x128xf32>
    %138 = math.exp %137 : vector<8x128xf32>
    %cst_26 = arith.constant 1.000000e+00 : f32
    %139 = vector.broadcast %cst_26 : f32 to vector<8x128xf32>
    %140 = arith.addf %139, %138 : vector<8x128xf32>
    %141 = arith.divf %139, %140 : vector<8x128xf32>
    %142 = vector.extract_strided_slice %132 {offsets = [0, 128], sizes = [8, 128], strides = [1, 1]} : vector<8x384xf32> to vector<8x128xf32>
    %143 = vector.extract_strided_slice %133 {offsets = [0, 128], sizes = [8, 128], strides = [1, 1]} : vector<8x384xf32> to vector<8x128xf32>
    %144 = arith.addf %142, %143 : vector<8x128xf32>
    %145 = arith.negf %144 : vector<8x128xf32>
    %146 = math.exp %145 : vector<8x128xf32>
    %cst_27 = arith.constant 1.000000e+00 : f32
    %147 = vector.broadcast %cst_27 : f32 to vector<8x128xf32>
    %148 = arith.addf %147, %146 : vector<8x128xf32>
    %149 = arith.divf %147, %148 : vector<8x128xf32>
    %150 = vector.extract_strided_slice %132 {offsets = [0, 256], sizes = [8, 128], strides = [1, 1]} : vector<8x384xf32> to vector<8x128xf32>
    %151 = vector.extract_strided_slice %133 {offsets = [0, 256], sizes = [8, 128], strides = [1, 1]} : vector<8x384xf32> to vector<8x128xf32>
    %152 = arith.addf %151, %14 : vector<8x128xf32>
    %153 = arith.mulf %141, %152 : vector<8x128xf32>
    %154 = arith.addf %150, %153 : vector<8x128xf32>
    %155 = math.tanh %154 : vector<8x128xf32>
    %cst_28 = arith.constant 1.000000e+00 : f32
    %156 = vector.broadcast %cst_28 : f32 to vector<8x128xf32>
    %157 = arith.subf %156, %149 : vector<8x128xf32>
    %158 = arith.mulf %157, %155 : vector<8x128xf32>
    %159 = arith.mulf %149, %131 : vector<8x128xf32>
    %160 = arith.addf %158, %159 : vector<8x128xf32>
    %161 = vector.extract_strided_slice %10 {offsets = [40, 0], sizes = [8, 384], strides = [1, 1]} : vector<64x384xf32> to vector<8x384xf32>
    %cst_29 = arith.constant dense<0.000000e+00> : vector<8x384xf32>
    %162 = tpu.matmul %160, %11, %cst_29 {dimension_numbers = #tpu.dot_dimension_numbers<[1], [0], [0], [1], [0, 0, 1, 1], [], []>} : vector<8x128xf32>, vector<128x384xf32>, vector<8x384xf32> -> vector<8x384xf32>
    %163 = vector.extract_strided_slice %161 {offsets = [0, 0], sizes = [8, 128], strides = [1, 1]} : vector<8x384xf32> to vector<8x128xf32>
    %164 = vector.extract_strided_slice %162 {offsets = [0, 0], sizes = [8, 128], strides = [1, 1]} : vector<8x384xf32> to vector<8x128xf32>
    %165 = arith.addf %163, %164 : vector<8x128xf32>
    %166 = arith.negf %165 : vector<8x128xf32>
    %167 = math.exp %166 : vector<8x128xf32>
    %cst_30 = arith.constant 1.000000e+00 : f32
    %168 = vector.broadcast %cst_30 : f32 to vector<8x128xf32>
    %169 = arith.addf %168, %167 : vector<8x128xf32>
    %170 = arith.divf %168, %169 : vector<8x128xf32>
    %171 = vector.extract_strided_slice %161 {offsets = [0, 128], sizes = [8, 128], strides = [1, 1]} : vector<8x384xf32> to vector<8x128xf32>
    %172 = vector.extract_strided_slice %162 {offsets = [0, 128], sizes = [8, 128], strides = [1, 1]} : vector<8x384xf32> to vector<8x128xf32>
    %173 = arith.addf %171, %172 : vector<8x128xf32>
    %174 = arith.negf %173 : vector<8x128xf32>
    %175 = math.exp %174 : vector<8x128xf32>
    %cst_31 = arith.constant 1.000000e+00 : f32
    %176 = vector.broadcast %cst_31 : f32 to vector<8x128xf32>
    %177 = arith.addf %176, %175 : vector<8x128xf32>
    %178 = arith.divf %176, %177 : vector<8x128xf32>
    %179 = vector.extract_strided_slice %161 {offsets = [0, 256], sizes = [8, 128], strides = [1, 1]} : vector<8x384xf32> to vector<8x128xf32>
    %180 = vector.extract_strided_slice %162 {offsets = [0, 256], sizes = [8, 128], strides = [1, 1]} : vector<8x384xf32> to vector<8x128xf32>
    %181 = arith.addf %180, %14 : vector<8x128xf32>
    %182 = arith.mulf %170, %181 : vector<8x128xf32>
    %183 = arith.addf %179, %182 : vector<8x128xf32>
    %184 = math.tanh %183 : vector<8x128xf32>
    %cst_32 = arith.constant 1.000000e+00 : f32
    %185 = vector.broadcast %cst_32 : f32 to vector<8x128xf32>
    %186 = arith.subf %185, %178 : vector<8x128xf32>
    %187 = arith.mulf %186, %184 : vector<8x128xf32>
    %188 = arith.mulf %178, %160 : vector<8x128xf32>
    %189 = arith.addf %187, %188 : vector<8x128xf32>
    %190 = vector.extract_strided_slice %10 {offsets = [48, 0], sizes = [8, 384], strides = [1, 1]} : vector<64x384xf32> to vector<8x384xf32>
    %cst_33 = arith.constant dense<0.000000e+00> : vector<8x384xf32>
    %191 = tpu.matmul %189, %11, %cst_33 {dimension_numbers = #tpu.dot_dimension_numbers<[1], [0], [0], [1], [0, 0, 1, 1], [], []>} : vector<8x128xf32>, vector<128x384xf32>, vector<8x384xf32> -> vector<8x384xf32>
    %192 = vector.extract_strided_slice %190 {offsets = [0, 0], sizes = [8, 128], strides = [1, 1]} : vector<8x384xf32> to vector<8x128xf32>
    %193 = vector.extract_strided_slice %191 {offsets = [0, 0], sizes = [8, 128], strides = [1, 1]} : vector<8x384xf32> to vector<8x128xf32>
    %194 = arith.addf %192, %193 : vector<8x128xf32>
    %195 = arith.negf %194 : vector<8x128xf32>
    %196 = math.exp %195 : vector<8x128xf32>
    %cst_34 = arith.constant 1.000000e+00 : f32
    %197 = vector.broadcast %cst_34 : f32 to vector<8x128xf32>
    %198 = arith.addf %197, %196 : vector<8x128xf32>
    %199 = arith.divf %197, %198 : vector<8x128xf32>
    %200 = vector.extract_strided_slice %190 {offsets = [0, 128], sizes = [8, 128], strides = [1, 1]} : vector<8x384xf32> to vector<8x128xf32>
    %201 = vector.extract_strided_slice %191 {offsets = [0, 128], sizes = [8, 128], strides = [1, 1]} : vector<8x384xf32> to vector<8x128xf32>
    %202 = arith.addf %200, %201 : vector<8x128xf32>
    %203 = arith.negf %202 : vector<8x128xf32>
    %204 = math.exp %203 : vector<8x128xf32>
    %cst_35 = arith.constant 1.000000e+00 : f32
    %205 = vector.broadcast %cst_35 : f32 to vector<8x128xf32>
    %206 = arith.addf %205, %204 : vector<8x128xf32>
    %207 = arith.divf %205, %206 : vector<8x128xf32>
    %208 = vector.extract_strided_slice %190 {offsets = [0, 256], sizes = [8, 128], strides = [1, 1]} : vector<8x384xf32> to vector<8x128xf32>
    %209 = vector.extract_strided_slice %191 {offsets = [0, 256], sizes = [8, 128], strides = [1, 1]} : vector<8x384xf32> to vector<8x128xf32>
    %210 = arith.addf %209, %14 : vector<8x128xf32>
    %211 = arith.mulf %199, %210 : vector<8x128xf32>
    %212 = arith.addf %208, %211 : vector<8x128xf32>
    %213 = math.tanh %212 : vector<8x128xf32>
    %cst_36 = arith.constant 1.000000e+00 : f32
    %214 = vector.broadcast %cst_36 : f32 to vector<8x128xf32>
    %215 = arith.subf %214, %207 : vector<8x128xf32>
    %216 = arith.mulf %215, %213 : vector<8x128xf32>
    %217 = arith.mulf %207, %189 : vector<8x128xf32>
    %218 = arith.addf %216, %217 : vector<8x128xf32>
    %219 = vector.extract_strided_slice %10 {offsets = [56, 0], sizes = [8, 384], strides = [1, 1]} : vector<64x384xf32> to vector<8x384xf32>
    %cst_37 = arith.constant dense<0.000000e+00> : vector<8x384xf32>
    %220 = tpu.matmul %218, %11, %cst_37 {dimension_numbers = #tpu.dot_dimension_numbers<[1], [0], [0], [1], [0, 0, 1, 1], [], []>} : vector<8x128xf32>, vector<128x384xf32>, vector<8x384xf32> -> vector<8x384xf32>
    %221 = vector.extract_strided_slice %219 {offsets = [0, 0], sizes = [8, 128], strides = [1, 1]} : vector<8x384xf32> to vector<8x128xf32>
    %222 = vector.extract_strided_slice %220 {offsets = [0, 0], sizes = [8, 128], strides = [1, 1]} : vector<8x384xf32> to vector<8x128xf32>
    %223 = arith.addf %221, %222 : vector<8x128xf32>
    %224 = arith.negf %223 : vector<8x128xf32>
    %225 = math.exp %224 : vector<8x128xf32>
    %cst_38 = arith.constant 1.000000e+00 : f32
    %226 = vector.broadcast %cst_38 : f32 to vector<8x128xf32>
    %227 = arith.addf %226, %225 : vector<8x128xf32>
    %228 = arith.divf %226, %227 : vector<8x128xf32>
    %229 = vector.extract_strided_slice %219 {offsets = [0, 128], sizes = [8, 128], strides = [1, 1]} : vector<8x384xf32> to vector<8x128xf32>
    %230 = vector.extract_strided_slice %220 {offsets = [0, 128], sizes = [8, 128], strides = [1, 1]} : vector<8x384xf32> to vector<8x128xf32>
    %231 = arith.addf %229, %230 : vector<8x128xf32>
    %232 = arith.negf %231 : vector<8x128xf32>
    %233 = math.exp %232 : vector<8x128xf32>
    %cst_39 = arith.constant 1.000000e+00 : f32
    %234 = vector.broadcast %cst_39 : f32 to vector<8x128xf32>
    %235 = arith.addf %234, %233 : vector<8x128xf32>
    %236 = arith.divf %234, %235 : vector<8x128xf32>
    %237 = vector.extract_strided_slice %219 {offsets = [0, 256], sizes = [8, 128], strides = [1, 1]} : vector<8x384xf32> to vector<8x128xf32>
    %238 = vector.extract_strided_slice %220 {offsets = [0, 256], sizes = [8, 128], strides = [1, 1]} : vector<8x384xf32> to vector<8x128xf32>
    %239 = arith.addf %238, %14 : vector<8x128xf32>
    %240 = arith.mulf %228, %239 : vector<8x128xf32>
    %241 = arith.addf %237, %240 : vector<8x128xf32>
    %242 = math.tanh %241 : vector<8x128xf32>
    %cst_40 = arith.constant 1.000000e+00 : f32
    %243 = vector.broadcast %cst_40 : f32 to vector<8x128xf32>
    %244 = arith.subf %243, %236 : vector<8x128xf32>
    %245 = arith.mulf %244, %242 : vector<8x128xf32>
    %246 = arith.mulf %236, %218 : vector<8x128xf32>
    %247 = arith.addf %245, %246 : vector<8x128xf32>
    %c0_41 = arith.constant 0 : index
    %c0_42 = arith.constant 0 : index
    %248 = vector.load %arg8[%c0_41, %c0_42] : memref<8x128xf32, #tpu.memory_space<vmem>>, vector<8x128xf32>
    tpu.vector_store %arg8[%c0_41, %c0_42], %247 {strides = array<i32>} : memref<8x128xf32, #tpu.memory_space<vmem>>, vector<8x128xf32>,
    %c0_43 = arith.constant 0 : index
    %c0_44 = arith.constant 0 : index
    %249 = vector.load %arg5[%c0_43, %c0_44] : memref<128x128xf32, #tpu.memory_space<vmem>>, vector<128x128xf32>
    %cst_45 = arith.constant dense<0.000000e+00> : vector<8x128xf32>
    %250 = tpu.matmul %247, %249, %cst_45 {dimension_numbers = #tpu.dot_dimension_numbers<[1], [0], [0], [1], [0, 0, 1, 1], [], []>} : vector<8x128xf32>, vector<128x128xf32>, vector<8x128xf32> -> vector<8x128xf32>
    %c0_46 = arith.constant 0 : index
    %c0_47 = arith.constant 0 : index
    %251 = vector.load %arg6[%c0_46, %c0_47] : memref<1x128xf32, #tpu.memory_space<vmem>>, vector<1x128xf32>
    %252 = vector.broadcast %251 : vector<1x128xf32> to vector<8x128xf32>
    %253 = arith.addf %250, %252 : vector<8x128xf32>
    %254 = arith.negf %253 : vector<8x128xf32>
    %255 = math.exp %254 : vector<8x128xf32>
    %cst_48 = arith.constant 1.000000e+00 : f32
    %256 = vector.broadcast %cst_48 : f32 to vector<8x128xf32>
    %257 = arith.addf %256, %255 : vector<8x128xf32>
    %258 = arith.divf %256, %257 : vector<8x128xf32>
    %c0_49 = arith.constant 0 : index
    %c0_50 = arith.constant 0 : index
    %259 = vector.load %arg7[%c0_49, %c0_50] : memref<8x128xf32, #tpu.memory_space<vmem>>, vector<8x128xf32>
    tpu.vector_store %arg7[%c0_49, %c0_50], %258 {strides = array<i32>} : memref<8x128xf32, #tpu.memory_space<vmem>>, vector<8x128xf32>,
    return
  }
}

</mosaic_0001>

<bundles_post_ra>
// kernel: gru_model_forward.1
= control target key start
LH: loop header
LB: loop body
LE: loop exit
PB: predicated region body
PF: predicated region fallthrough
CT: control target
= control target key end

     0   :  { %v2548_v0 = vmov 0   ;;  %v4088_v6 = vmov 0.0   ;;  %v28_v59 = vlaneseq  ;;  %s4079_s0 = inlined_call_operand.vmem [shape: s32[64,1], index: 0, kind: input, shape index: {}]   ;;  %s4080_s1 = inlined_call_operand.vmem [shape: f32[128,384], index: 1, kind: input, shape index: {}]   ;;  %s4081_s2 = inlined_call_operand.vmem [shape: f32[128,384], index: 2, kind: input, shape index: {}]   ;;  %s4082_s4 = inlined_call_operand.vmem [shape: f32[8,128], index: 4, kind: input, shape index: {}]   ;;  %s4083_s3 = inlined_call_operand.vmem [shape: f32[1,128], index: 3, kind: input, shape index: {}]   ;;  %s4084_s5 = inlined_call_operand.vmem [shape: f32[128,128], index: 5, kind: input, shape index: {}]   ;;  %s4085_s8 = inlined_call_operand.vmem [shape: f32[8,128], index: 8, kind: output, shape index: {1}]   ;;  %s4086_s6 = inlined_call_operand.vmem [shape: f32[1,128], index: 6, kind: input, shape index: {}]   ;;  %s4087_s7 = inlined_call_operand.vmem [shape: f32[8,128], index: 7, kind: output, shape index: {0}]  }
   0x1   :  { %2414 = vset.pattern.permute.xlu1 %v2548_v0  ;;  %2413 = vset.pattern.permute.xlu0 %v2548_v0  ;;  %v32_v1 = vld [vmem:[%s4079_s0 + $0x10] sm:$0xff]  ;;  %v30_v2 = vld [vmem:[%s4079_s0] sm:$0xff]  ;;  %v33_v3 = vld [vmem:[%s4079_s0 + $0x18] sm:$0xff] }
   0x2   :  { %45 = vperm.xlu1 %2414, %v32_v1   ;;  %39 = vperm.xlu0 %2413, %v30_v2   ;;  %v31_v4 = vld [vmem:[%s4079_s0 + $0x8] sm:$0xff]  ;;  %v141_v5 = vld [vmem:[%s4080_s1 + $0x170] sm:$0xff]  ;;  %v138_v8 = vld [vmem:[%s4080_s1 + $0x158] sm:$0xff]  ;;  %v2773_v60 = vand.u32 127, %v28_v59  ;;  %v2550_v1 = vmov 1.0  }
   0x3   :  { %207 = vmatprep.mubr.f32.mxu0 %v4088_v6  ;;  %143 = vmatprep.subr.mxu0 %v141_v5  ;;  %v140_v7 = vld [vmem:[%s4080_s1 + $0x168] sm:$0xff]  ;;  %v137_v9 = vld [vmem:[%s4080_s1 + $0x150] sm:$0xff]  ;;  %v142_v10 = vld [vmem:[%s4080_s1 + $0x178] sm:$0xff] }
   0x4   :  { %144 = vmatpush1.msra.mxu0 %v140_v7  ;;  %v135_v11 = vld [vmem:[%s4080_s1 + $0x140] sm:$0xff]  ;;  %v35_v13 = vld [vmem:[%s4079_s0 + $0x28] sm:$0xff]  ;;  %2050 = vmatprep.subr.mxu1 %v142_v10  ;;  %v134_v15 = vld [vmem:[%s4080_s1 + $0x138] sm:$0xff]  ;;  %vm70_vm0 = vcmp.eq.s32.totalorder %v2773_v60, 127 }
   0x5   :  { %v139_v12 = vld [vmem:[%s4080_s1 + $0x160] sm:$0xff]  ;;  %145 = vmatprep.subr.mxu0 %v138_v8  ;;  %2051 = vmatpush3.msra.mxu1 %v142_v10  ;;  %v132_v16 = vld [vmem:[%s4080_s1 + $0x128] sm:$0xff]  ;;  %v37_v19 = vld [vmem:[%s4079_s0 + $0x38] sm:$0xff] }
   0x6   :  { %48 = vperm.xlu1 %2414, %v33_v3   ;;  %42 = vperm.xlu0 %2413, %v31_v4   ;;  %v34_v14 = vld [vmem:[%s4079_s0 + $0x20] sm:$0xff]  ;;  %v136_v17 = vld [vmem:[%s4080_s1 + $0x148] sm:$0xff]  ;;  %v36_v20 = vld [vmem:[%s4079_s0 + $0x30] sm:$0xff] }
   0x7   :  { %146 = vmatpush1.msra.mxu0 %v137_v9  ;;  %2052 = vmatprep.subr.mxu1 %v139_v12  ;;  %v131_v18 = vld [vmem:[%s4080_s1 + $0x120] sm:$0xff]  ;;  %v129_v21 = vld [vmem:[%s4080_s1 + $0x110] sm:$0xff]  ;;  %v128_v23 = vld [vmem:[%s4080_s1 + $0x108] sm:$0xff] }
   0x8   :  { %147 = vmatprep.subr.mxu0 %v135_v11  ;;  %2053 = vmatpush3.msra.mxu1 %v139_v12  ;;  %v133_v22 = vld [vmem:[%s4080_s1 + $0x130] sm:$0xff]  ;;  %v126_v24 = vld [vmem:[%s4080_s1 + $0xf8] sm:$0xff]  ;;  %v123_v27 = vld [vmem:[%s4080_s1 + $0xe0] sm:$0xff] }
   0x9   :  { %148 = vmatpush1.msra.mxu0 %v134_v15  ;;  %2054 = vmatprep.subr.mxu1 %v136_v17  ;;  %v130_v25 = vld [vmem:[%s4080_s1 + $0x118] sm:$0xff]  ;;  %v125_v26 = vld [vmem:[%s4080_s1 + $0xf0] sm:$0xff]  ;;  %v127_v28 = vld [vmem:[%s4080_s1 + $0x100] sm:$0xff] }
   0xa   :  { %54 = vperm.xlu1 %2414, %v35_v13   ;;  %51 = vperm.xlu0 %2413, %v34_v14   ;;  %v122_v29 = vld [vmem:[%s4080_s1 + $0xd8] sm:$0xff]  ;;  %v120_v30 = vld [vmem:[%s4080_s1 + $0xc8] sm:$0xff]  ;;  %v119_v32 = vld [vmem:[%s4080_s1 + $0xc0] sm:$0xff] }
   0xb   :  { %149 = vmatprep.subr.mxu0 %v132_v16  ;;  %2055 = vmatpush3.msra.mxu1 %v136_v17  ;;  %v124_v31 = vld [vmem:[%s4080_s1 + $0xe8] sm:$0xff]  ;;  %v117_v33 = vld [vmem:[%s4080_s1 + $0xb0] sm:$0xff]  ;;  %v114_v36 = vld [vmem:[%s4080_s1 + $0x98] sm:$0xff] }
   0xc   :  { %150 = vmatpush1.msra.mxu0 %v131_v18  ;;  %2056 = vmatprep.subr.mxu1 %v133_v22  ;;  %v121_v34 = vld [vmem:[%s4080_s1 + $0xd0] sm:$0xff]  ;;  %v116_v35 = vld [vmem:[%s4080_s1 + $0xa8] sm:$0xff]  ;;  %v118_v37 = vld [vmem:[%s4080_s1 + $0xb8] sm:$0xff] }
   0xd   :  { %151 = vmatprep.subr.mxu0 %v129_v21  ;;  %2057 = vmatpush3.msra.mxu1 %v133_v22  ;;  %v113_v38 = vld [vmem:[%s4080_s1 + $0x90] sm:$0xff]  ;;  %v111_v39 = vld [vmem:[%s4080_s1 + $0x80] sm:$0xff]  ;;  %v110_v41 = vld [vmem:[%s4080_s1 + $0x78] sm:$0xff] }
   0xe   :  { %60 = vperm.xlu1 %2414, %v37_v19   ;;  %57 = vperm.xlu0 %2413, %v36_v20   ;;  %v115_v40 = vld [vmem:[%s4080_s1 + $0xa0] sm:$0xff]  ;;  %v108_v42 = vld [vmem:[%s4080_s1 + $0x68] sm:$0xff]  ;;  %v105_v45 = vld [vmem:[%s4080_s1 + $0x50] sm:$0xff] }
   0xf   :  { %152 = vmatpush1.msra.mxu0 %v128_v23  ;;  %2058 = vmatprep.subr.mxu1 %v130_v25  ;;  %v112_v43 = vld [vmem:[%s4080_s1 + $0x88] sm:$0xff]  ;;  %v107_v44 = vld [vmem:[%s4080_s1 + $0x60] sm:$0xff]  ;;  %v109_v46 = vld [vmem:[%s4080_s1 + $0x70] sm:$0xff] }
  0x10   :  { %153 = vmatprep.subr.mxu0 %v126_v24  ;;  %2059 = vmatpush3.msra.mxu1 %v130_v25  ;;  %v104_v47 = vld [vmem:[%s4080_s1 + $0x48] sm:$0xff]  ;;  %v102_v48 = vld [vmem:[%s4080_s1 + $0x38] sm:$0xff]  ;;  %v101_v50 = vld [vmem:[%s4080_s1 + $0x30] sm:$0xff] }
  0x11   :  { %154 = vmatpush1.msra.mxu0 %v125_v26  ;;  %2060 = vmatprep.subr.mxu1 %v127_v28  ;;  %v106_v49 = vld [vmem:[%s4080_s1 + $0x58] sm:$0xff]  ;;  %v99_v51 = vld [vmem:[%s4080_s1 + $0x20] sm:$0xff]  ;;  %v96_v54 = vld [vmem:[%s4080_s1 + $0x8] sm:$0xff] }
  0x12   :  { %155 = vmatprep.subr.mxu0 %v123_v27  ;;  %2061 = vmatpush3.msra.mxu1 %v127_v28  ;;  %v103_v52 = vld [vmem:[%s4080_s1 + $0x40] sm:$0xff]  ;;  %v98_v53 = vld [vmem:[%s4080_s1 + $0x18] sm:$0xff]  ;;  %v100_v55 = vld [vmem:[%s4080_s1 + $0x28] sm:$0xff] }
  0x13   :  { %156 = vmatpush1.msra.mxu0 %v122_v29  ;;  %2062 = vmatprep.subr.mxu1 %v124_v31  ;;  %v95_v56 = vld [vmem:[%s4080_s1] sm:$0xff]  ;;  %v2766_v57 = vld [vmem:[%s4081_s2 + $0x170] sm:$0xff]  ;;  %v2780_v63 = vld [vmem:[%s4081_s2 + $0x168] sm:$0xff] }
  0x14   :  { %157 = vmatprep.subr.mxu0 %v120_v30  ;;  %2063 = vmatpush3.msra.mxu1 %v124_v31  ;;  %4104 = vst [vmem:[#allocation2_spill] sm:$0xff] %v2766_v57  ;;  %v97_v58 = vld [vmem:[%s4080_s1 + $0x10] sm:$0xff]  ;;  %v2787_v0 = vld [vmem:[%s4081_s2 + $0x158] sm:$0xff]  ;;  %v2803_v5 = vld [vmem:[%s4081_s2 + $0x140] sm:$0xff] }
  0x15   :  { %158 = vmatpush1.msra.mxu0 %v119_v32  ;;  %2064 = vmatprep.subr.mxu1 %v121_v34  ;;  %v2794_v4 = vld [vmem:[%s4081_s2 + $0x150] sm:$0xff]  ;;  %v2809_v7 = vld [vmem:[%s4081_s2 + $0x138] sm:$0xff]  ;;  %v2818_v8 = vld [vmem:[%s4081_s2 + $0x128] sm:$0xff] }
  0x16   :  { %159 = vmatprep.subr.mxu0 %v117_v33  ;;  %2065 = vmatpush3.msra.mxu1 %v121_v34  ;;  %v2831_v12 = vld [vmem:[%s4081_s2 + $0x120] sm:$0xff]  ;;  %v2839_v13 = vld [vmem:[%s4081_s2 + $0x110] sm:$0xff]  ;;  %v2852_v15 = vld [vmem:[%s4081_s2 + $0x108] sm:$0xff] }
  0x17   :  { %160 = vmatpush1.msra.mxu0 %v116_v35  ;;  %2066 = vmatprep.subr.mxu1 %v118_v37  ;;  %v2867_v17 = vld [vmem:[%s4081_s2 + $0xf8] sm:$0xff]  ;;  %v2876_v19 = vld [vmem:[%s4081_s2 + $0xf0] sm:$0xff]  ;;  %v2887_v20 = vld [vmem:[%s4081_s2 + $0xe0] sm:$0xff] }
  0x18   :  { %161 = vmatprep.subr.mxu0 %v114_v36  ;;  %2067 = vmatpush3.msra.mxu1 %v118_v37  ;;  %v2896_v22 = vld [vmem:[%s4081_s2 + $0xd8] sm:$0xff]  ;;  %v2909_v24 = vld [vmem:[%s4081_s2 + $0xc8] sm:$0xff]  ;;  %v2924_v26 = vld [vmem:[%s4081_s2 + $0xc0] sm:$0xff] }
  0x19   :  { %162 = vmatpush1.msra.mxu0 %v113_v38  ;;  %2068 = vmatprep.subr.mxu1 %v115_v40  ;;  %v2934_v27 = vld [vmem:[%s4081_s2 + $0xb0] sm:$0xff]  ;;  %v2943_v28 = vld [vmem:[%s4081_s2 + $0xa8] sm:$0xff]  ;;  %v2950_v29 = vld [vmem:[%s4081_s2 + $0x98] sm:$0xff] }
  0x1a   :  { %163 = vmatprep.subr.mxu0 %v111_v39  ;;  %2069 = vmatpush3.msra.mxu1 %v115_v40  ;;  %v2965_v31 = vld [vmem:[%s4081_s2 + $0x90] sm:$0xff]  ;;  %v2970_v32 = vld [vmem:[%s4081_s2 + $0x178] sm:$0xff]  ;;  %v2979_v33 = vld [vmem:[%s4081_s2 + $0x80] sm:$0xff] }
  0x1b   :  { %164 = vmatpush1.msra.mxu0 %v110_v41  ;;  %2070 = vmatprep.subr.mxu1 %v112_v43  ;;  %v2986_v34 = vld [vmem:[%s4081_s2 + $0x78] sm:$0xff]  ;;  %v2992_v35 = vld [vmem:[%s4081_s2 + $0x68] sm:$0xff]  ;;  %v3002_v36 = vld [vmem:[%s4081_s2 + $0x60] sm:$0xff] }
  0x1c   :  { %165 = vmatprep.subr.mxu0 %v108_v42  ;;  %2071 = vmatpush3.msra.mxu1 %v112_v43  ;;  %v3007_v37 = vld [vmem:[%s4081_s2 + $0x160] sm:$0xff]  ;;  %v3014_v38 = vld [vmem:[%s4081_s2 + $0x50] sm:$0xff]  ;;  %v3020_v39 = vld [vmem:[%s4081_s2 + $0x48] sm:$0xff] }
  0x1d   :  { %166 = vmatpush1.msra.mxu0 %v107_v44  ;;  %2072 = vmatprep.subr.mxu1 %v109_v46  ;;  %v3027_v40 = vld [vmem:[%s4081_s2 + $0x38] sm:$0xff]  ;;  %v3037_v41 = vld [vmem:[%s4081_s2 + $0x30] sm:$0xff]  ;;  %v3042_v42 = vld [vmem:[%s4081_s2 + $0x148] sm:$0xff] }
  0x1e   :  { %167 = vmatprep.subr.mxu0 %v105_v45  ;;  %2073 = vmatpush3.msra.mxu1 %v109_v46  ;;  %v3049_v43 = vld [vmem:[%s4081_s2 + $0x20] sm:$0xff]  ;;  %v3055_v44 = vld [vmem:[%s4081_s2 + $0x18] sm:$0xff]  ;;  %v3062_v45 = vld [vmem:[%s4081_s2 + $0x8] sm:$0xff] }
  0x1f   :  { %168 = vmatpush1.msra.mxu0 %v104_v47  ;;  %2074 = vmatprep.subr.mxu1 %v106_v49  ;;  %4117 = vst [vmem:[#allocation3_spill] sm:$0xff] %v3062_v45  ;;  %v3072_v46 = vld [vmem:[%s4081_s2] sm:$0xff]  ;;  %v3077_v47 = vld [vmem:[%s4081_s2 + $0x130] sm:$0xff] }
  0x20   :  { %169 = vmatprep.subr.mxu0 %v102_v48  ;;  %2075 = vmatpush3.msra.mxu1 %v106_v49  ;;  %4118 = vst [vmem:[#allocation4_spill] sm:$0xff] %v3072_v46  ;;  %v3084_v48 = vld [vmem:[%s4082_s4] sm:$0xff]  ;;  %v3091_v49 = vld [vmem:[%s4081_s2 + $0x118] sm:$0xff] }
  0x21   :  { %170 = vmatpush1.msra.mxu0 %v101_v50  ;;  %2076 = vmatprep.subr.mxu1 %v103_v52  ;;  %v3100_v50 = vld [vmem:[%s4081_s2 + $0x100] sm:$0xff] }
  0x22   :  { %171 = vmatprep.subr.mxu0 %v99_v51  ;;  %2077 = vmatpush3.msra.mxu1 %v103_v52  ;;  %v3109_v51 = vld [vmem:[%s4081_s2 + $0xe8] sm:$0xff]  ;;  %v3118_v52 = vld [vmem:[%s4081_s2 + $0xd0] sm:$0xff]  ;;  %v3172_v59 = vld [vmem:[%s4081_s2 + $0x40] sm:$0xff] }
  0x23   :  { %172 = vmatpush1.msra.mxu0 %v98_v53  ;;  %2078 = vmatprep.subr.mxu1 %v100_v55  ;;  %v3127_v53 = vld [vmem:[%s4081_s2 + $0xb8] sm:$0xff] }
  0x24   :  { %173 = vmatprep.subr.mxu0 %v96_v54  ;;  %2079 = vmatpush3.msra.mxu1 %v100_v55  ;;  %v3136_v54 = vld [vmem:[%s4081_s2 + $0xa0] sm:$0xff]  ;;  %v3145_v55 = vld [vmem:[%s4081_s2 + $0x88] sm:$0xff] }
  0x25   :  { %174 = vmatpush1.msra.mxu0 %v95_v56  ;;  %2080 = vmatprep.subr.mxu1 %v97_v58  ;;  %v3154_v56 = vld [vmem:[%s4081_s2 + $0x70] sm:$0xff] }
  0x26   :  { %417 = vmatprep.subr.mxu0 %v2766_v57  ;;  %2081 = vmatpush3.msra.mxu1 %v97_v58  ;;  %v3163_v58 = vld [vmem:[%s4081_s2 + $0x58] sm:$0xff] }
  0x27   :  { %2094 = vmatprep.subr.mxu1 %v4088_v6 }
  0x7d   :  { %v46_v61 = vpop.permute.xlu1 %45  ;;  %v40_v62 = vpop.permute.xlu0 %39 }
  0x7e   :  { %vm62_vm1 = vcmp.eq.s32.totalorder %v2773_v60, %v40_v62  ;;  %vm64_vm3 = vcmp.eq.s32.totalorder %v2773_v60, %v46_v61  ;;  %v3190_v61 = vld [vmem:[%s4081_s2 + $0x10] sm:$0xff] }
  0x7f   :  { %vm71_vm2 = vmor %vm62_vm1, %vm70_vm0  ;;  %4120 = vst [vmem:[#allocation6_spill] sm:$0xff] %v3190_v61 }
  0x80   :  { %1838 = vmatmul.mubr.msk.f32.vlgmr.msra.gmra.mxu0 %vm71_vm2, %v2550_v1  ;;  %2082 = vmatprep.mubr.msk.f32.mxu1 %vm71_vm2, %v2550_v1  ;;  %vm2822_vm7 = vmor %vm64_vm3, %vm70_vm0 }
  0x81   :  { %v49_v2 = vpop.permute.xlu1 %48  ;;  %v43_v3 = vpop.permute.xlu0 %42  ;;  %418 = vmatpush1.msra.mxu0 %v2780_v63  ;;  %213 = vmatprep.mubr.f32.mxu0 %v4088_v6 }
  0x82   :  { %vm63_vm4 = vcmp.eq.s32.totalorder %v2773_v60, %v43_v3  ;;  %419 = vmatprep.subr.mxu0 %v2787_v0  ;;  %vm65_vm5 = vcmp.eq.s32.totalorder %v2773_v60, %v49_v2 }
  0x83   :  { %vm72_vm6 = vmor %vm63_vm4, %vm70_vm0  ;;  %420 = vmatpush1.msra.mxu0 %v2794_v4 }
  0x84   :  { %421 = vmatprep.subr.mxu0 %v2803_v5  ;;  %1839 = vmatmul.mubr.msk.f32.gmra.mxu0 %vm72_vm6, %v2550_v1  ;;  %vm2843_vm9 = vmor %vm65_vm5, %vm70_vm0 }
  0x85   :  { %v55_v10 = vpop.permute.xlu1 %54  ;;  %v52_v11 = vpop.permute.xlu0 %51  ;;  %2083 = vmatmul.mubr.msk.f32.vlgmr.msra.gmra.mxu1 %vm72_vm6, %v2550_v1  ;;  %422 = vmatpush1.msra.mxu0 %v2809_v7 }
  0x86   :  { %vm66_vm8 = vcmp.eq.s32.totalorder %v2773_v60, %v52_v11  ;;  %423 = vmatprep.subr.mxu0 %v2818_v8  ;;  %219 = vmatprep.mubr.f32.mxu0 %v4088_v6  ;;  %vm67_vm11 = vcmp.eq.s32.totalorder %v2773_v60, %v55_v10 }
  0x87   :  { %vm2856_vm10 = vmor %vm66_vm8, %vm70_vm0  ;;  %424 = vmatpush1.msra.mxu0 %v2831_v12  ;;  %2085 = vmatprep.mubr.msk.f32.mxu1 %vm2822_vm7, %v2550_v1 }
  0x88   :  { %425 = vmatprep.subr.mxu0 %v2839_v13  ;;  %1840 = vmatmul.mubr.msk.f32.gmra.mxu0 %vm2822_vm7, %v2550_v1  ;;  %vm2913_vm14 = vmor %vm67_vm11, %vm70_vm0 }
  0x89   :  { %v58_v18 = vpop.permute.xlu0 %57  ;;  %2086 = vmatmul.mubr.msk.f32.gmra.mxu1 %vm2843_vm9, %v2550_v1  ;;  %426 = vmatpush1.msra.mxu0 %v2852_v15  ;;  %v61_v21 = vpop.permute.xlu1 %60 }
  0x8a   :  { %vm68_vm12 = vcmp.eq.s32.totalorder %v2773_v60, %v58_v18  ;;  %2088 = vmatprep.mubr.msk.f32.mxu1 %vm2856_vm10, %v2550_v1  ;;  %427 = vmatprep.subr.mxu0 %v2867_v17  ;;  %vm69_vm15 = vcmp.eq.s32.totalorder %v2773_v60, %v61_v21  ;;  %v3181_v60 = vld [vmem:[%s4081_s2 + $0x28] sm:$0xff] }
  0x8b   :  { %vm2900_vm13 = vmor %vm68_vm12, %vm70_vm0  ;;  %428 = vmatpush1.msra.mxu0 %v2876_v19  ;;  %225 = vmatprep.mubr.f32.mxu0 %v4088_v6  ;;  %4119 = vst [vmem:[#allocation5_spill] sm:$0xff] %v3181_v60 }
  0x8c   :  { %429 = vmatprep.subr.mxu0 %v2887_v20  ;;  %1841 = vmatmul.mubr.msk.f32.gmra.mxu0 %vm2843_vm9, %v2550_v1  ;;  %vm2954_vm1 = vmor %vm69_vm15, %vm70_vm0  ;;  %vm2551_vm0 = vmmov 0  }
  0x8d   :  { %2089 = vmatmul.mubr.msk.f32.gmra.mxu1 %vm2913_vm14, %v2550_v1  ;;  %430 = vmatpush1.msra.mxu0 %v2896_v22 }
  0x8e   :  { %2091 = vmatprep.mubr.msk.f32.mxu1 %vm2900_vm13, %v2550_v1  ;;  %431 = vmatprep.subr.mxu0 %v2909_v24 }
  0x8f   :  { %432 = vmatpush1.msra.mxu0 %v2924_v26  ;;  %231 = vmatprep.mubr.f32.mxu0 %v4088_v6 }
  0x90   :  { %433 = vmatprep.subr.mxu0 %v2934_v27  ;;  %1842 = vmatmul.mubr.msk.f32.gmra.mxu0 %vm2856_vm10, %v2550_v1 }
  0x91   :  { %2092 = vmatmul.mubr.msk.f32.gmra.mxu1 %vm2954_vm1, %v2550_v1  ;;  %434 = vmatpush1.msra.mxu0 %v2943_v28 }
  0x92   :  { %435 = vmatprep.subr.mxu0 %v2950_v29  ;;  %237 = vmatprep.mubr.f32.mxu0 %v4088_v6 }
  0x93   :  { %436 = vmatpush1.msra.mxu0 %v2965_v31  ;;  %2095 = vmatpush3.msra.mxu1 %v2970_v32 }
  0x94   :  { %437 = vmatprep.subr.mxu0 %v2979_v33  ;;  %1843 = vmatmul.mubr.msk.f32.gmra.mxu0 %vm2913_vm14, %v2550_v1 }
  0x95   :  { %438 = vmatpush1.msra.mxu0 %v2986_v34  ;;  %243 = vmatprep.mubr.f32.mxu0 %v4088_v6 }
  0x96   :  { %439 = vmatprep.subr.mxu0 %v2992_v35  ;;  %2096 = vmatprep.subr.mxu1 %v4088_v6 }
  0x97   :  { %440 = vmatpush1.msra.mxu0 %v3002_v36  ;;  %2097 = vmatpush3.msra.mxu1 %v3007_v37 }
  0x98   :  { %441 = vmatprep.subr.mxu0 %v3014_v38  ;;  %1844 = vmatmul.mubr.msk.f32.gmra.mxu0 %vm2900_vm13, %v2550_v1 }
  0x99   :  { %442 = vmatpush1.msra.mxu0 %v3020_v39  ;;  %249 = vmatprep.mubr.f32.mxu0 %v4088_v6 }
  0x9a   :  { %443 = vmatprep.subr.mxu0 %v3027_v40  ;;  %2098 = vmatprep.subr.mxu1 %v4088_v6 }
  0x9b   :  { %444 = vmatpush1.msra.mxu0 %v3037_v41  ;;  %2099 = vmatpush3.msra.mxu1 %v3042_v42 }
  0x9c   :  { %445 = vmatprep.subr.mxu0 %v3049_v43  ;;  %1845 = vmatmul.mubr.msk.f32.gmra.mxu0 %vm2954_vm1, %v2550_v1 }
  0x9d   :  { %446 = vmatpush1.msra.mxu0 %v3055_v44  ;;  %481 = vmatprep.mubr.f32.mxu0 %v4088_v6 }
  0x9e   :  { %447 = vmatprep.subr.mxu0 %v3062_v45  ;;  %2100 = vmatprep.subr.mxu1 %v4088_v6 }
  0x9f   :  { %448 = vmatpush1.msra.mxu0 %v3072_v46  ;;  %2101 = vmatpush3.msra.mxu1 %v3077_v47 }
  0xa0   :  { %482 = vmatmul.mubr.f32.vlgmr.msra.gmra.mxu0 %v3084_v48  ;;  %2102 = vmatprep.subr.mxu1 %v4088_v6 }
  0xa1   :  { %2103 = vmatpush3.msra.mxu1 %v3091_v49  ;;  %2126 = vmatprep.mubr.msk.f32.mxu1 %vm2551_vm0, %v4088_v6 }
  0xa2   :  { %2104 = vmatprep.subr.mxu1 %v4088_v6  ;;  %580 = vmatprep.subr.mxu0 %v2766_v57 }
  0xa3   :  { %2105 = vmatpush3.msra.mxu1 %v3100_v50  ;;  %581 = vmatpush1.msra.mxu0 %v2780_v63 }
  0xa4   :  { %2106 = vmatprep.subr.mxu1 %v4088_v6  ;;  %582 = vmatprep.subr.mxu0 %v2787_v0 }
  0xa5   :  { %2107 = vmatpush3.msra.mxu1 %v3109_v51  ;;  %583 = vmatpush1.msra.mxu0 %v2794_v4 }
  0xa6   :  { %2108 = vmatprep.subr.mxu1 %v4088_v6  ;;  %584 = vmatprep.subr.mxu0 %v2803_v5 }
  0xa7   :  { %2109 = vmatpush3.msra.mxu1 %v3118_v52  ;;  %585 = vmatpush1.msra.mxu0 %v2809_v7 }
  0xa8   :  { %2110 = vmatprep.subr.mxu1 %v4088_v6  ;;  %586 = vmatprep.subr.mxu0 %v2818_v8 }
  0xa9   :  { %2111 = vmatpush3.msra.mxu1 %v3127_v53  ;;  %587 = vmatpush1.msra.mxu0 %v2831_v12 }
  0xaa   :  { %2112 = vmatprep.subr.mxu1 %v4088_v6  ;;  %588 = vmatprep.subr.mxu0 %v2839_v13 }
  0xab   :  { %2113 = vmatpush3.msra.mxu1 %v3136_v54  ;;  %589 = vmatpush1.msra.mxu0 %v2852_v15 }
  0xac   :  { %2114 = vmatprep.subr.mxu1 %v4088_v6  ;;  %590 = vmatprep.subr.mxu0 %v2867_v17 }
  0xad   :  { %2115 = vmatpush3.msra.mxu1 %v3145_v55  ;;  %591 = vmatpush1.msra.mxu0 %v2876_v19 }
  0xae   :  { %2116 = vmatprep.subr.mxu1 %v4088_v6  ;;  %592 = vmatprep.subr.mxu0 %v2887_v20 }
  0xaf   :  { %2117 = vmatpush3.msra.mxu1 %v3154_v56  ;;  %593 = vmatpush1.msra.mxu0 %v2896_v22 }
  0xb0   :  { %2118 = vmatprep.subr.mxu1 %v4088_v6  ;;  %594 = vmatprep.subr.mxu0 %v2909_v24 }
  0xb1   :  { %2119 = vmatpush3.msra.mxu1 %v3163_v58  ;;  %595 = vmatpush1.msra.mxu0 %v2924_v26 }
  0xb2   :  { %2120 = vmatprep.subr.mxu1 %v4088_v6  ;;  %596 = vmatprep.subr.mxu0 %v2934_v27 }
  0xb3   :  { %2121 = vmatpush3.msra.mxu1 %v3172_v59  ;;  %597 = vmatpush1.msra.mxu0 %v2943_v28 }
  0xb4   :  { %2122 = vmatprep.subr.mxu1 %v4088_v6  ;;  %598 = vmatprep.subr.mxu0 %v2950_v29 }
  0xb5   :  { %2123 = vmatpush3.msra.mxu1 %v3181_v60  ;;  %599 = vmatpush1.msra.mxu0 %v2965_v31 }
  0xb6   :  { %2124 = vmatprep.subr.mxu1 %v4088_v6  ;;  %600 = vmatprep.subr.mxu0 %v2979_v33 }
  0xb7   :  { %2125 = vmatpush3.msra.mxu1 %v3190_v61  ;;  %601 = vmatpush1.msra.mxu0 %v2986_v34 }
  0xb8   :  { %2127 = vmatmul.mubr.f32.vlgmr.msra.gmra.mxu1 %v3084_v48  ;;  %2129 = vmatprep.subr.mxu1 %v4088_v6 }
  0xb9   :  { %2130 = vmatpush3.msra.mxu1 %v2970_v32  ;;  %602 = vmatprep.subr.mxu0 %v2992_v35 }
  0xba   :  { %2131 = vmatprep.subr.mxu1 %v4088_v6  ;;  %603 = vmatpush1.msra.mxu0 %v3002_v36 }
  0xbb   :  { %2132 = vmatpush3.msra.mxu1 %v3007_v37  ;;  %604 = vmatprep.subr.mxu0 %v3014_v38 }
  0xbc   :  { %2133 = vmatprep.subr.mxu1 %v4088_v6  ;;  %605 = vmatpush1.msra.mxu0 %v3020_v39 }
  0xbd   :  { %2134 = vmatpush3.msra.mxu1 %v3042_v42  ;;  %606 = vmatprep.subr.mxu0 %v3027_v40 }
  0xbe   :  { %2135 = vmatprep.subr.mxu1 %v4088_v6  ;;  %607 = vmatpush1.msra.mxu0 %v3037_v41 }
  0xbf   :  { %2136 = vmatpush3.msra.mxu1 %v3077_v47  ;;  %608 = vmatprep.subr.mxu0 %v3049_v43 }
  0xc0   :  { %2137 = vmatprep.subr.mxu1 %v4088_v6  ;;  %609 = vmatpush1.msra.mxu0 %v3055_v44 }
  0xc1   :  { %2138 = vmatpush3.msra.mxu1 %v3091_v49  ;;  %610 = vmatprep.subr.mxu0 %v3062_v45 }
  0xc2   :  { %2139 = vmatprep.subr.mxu1 %v4088_v6  ;;  %611 = vmatpush1.msra.mxu0 %v3072_v46 }
  0xc3   :  { %2140 = vmatpush3.msra.mxu1 %v3100_v50  ;;  %644 = vmatprep.mubr.f32.mxu0 %v4088_v6 }
  0xc4   :  { %2141 = vmatprep.subr.mxu1 %v4088_v6  ;;  %2161 = vmatprep.mubr.msk.f32.mxu1 %vm2551_vm0, %v4088_v6 }
  0xc5   :  { %2142 = vmatpush3.msra.mxu1 %v3109_v51  ;;  %743 = vmatprep.subr.mxu0 %v2766_v57 }
  0xc6   :  { %2143 = vmatprep.subr.mxu1 %v4088_v6 }
  0xc7   :  { %2144 = vmatpush3.msra.mxu1 %v3118_v52 }
  0xc8   :  { %2145 = vmatprep.subr.mxu1 %v4088_v6 }
  0xc9   :  { %2146 = vmatpush3.msra.mxu1 %v3127_v53 }
  0xca   :  { %2147 = vmatprep.subr.mxu1 %v4088_v6 }
  0xcb   :  { %2148 = vmatpush3.msra.mxu1 %v3136_v54 }
  0xcc   :  { %2149 = vmatprep.subr.mxu1 %v4088_v6 }
  0xcd   :  { %2150 = vmatpush3.msra.mxu1 %v3145_v55 }
  0xce   :  { %2151 = vmatprep.subr.mxu1 %v4088_v6 }
  0xcf   :  { %2152 = vmatpush3.msra.mxu1 %v3154_v56 }
  0xd0   :  { %2153 = vmatprep.subr.mxu1 %v4088_v6 }
  0xd1   :  { %2154 = vmatpush3.msra.mxu1 %v3163_v58 }
  0xd2   :  { %2155 = vmatprep.subr.mxu1 %v4088_v6 }
  0xd3   :  { %2156 = vmatpush3.msra.mxu1 %v3172_v59 }
  0xd4   :  { %2157 = vmatprep.subr.mxu1 %v4088_v6 }
  0xd5   :  { %2158 = vmatpush3.msra.mxu1 %v3181_v60 }
  0xd6   :  { %2159 = vmatprep.subr.mxu1 %v4088_v6 }
  0xd7   :  { %2160 = vmatpush3.msra.mxu1 %v3190_v61 }
  0xd8   :  { %2164 = vmatprep.subr.mxu1 %v4088_v6 }
 0x140   :  { %v209_v62 = vpop.f32.mrf.mxu0 }
 0x142   :  { %v211_v1 = vpop.f32.mrf.mxu0 }
 0x144   :  { %v3247_v2 = vpop.f32.mrf.mxu0 }
 0x145   :  { %4121 = vst [vmem:[#allocation7_spill] sm:$0xff] %v3247_v2  ;;  %v3269_v30 = vpop.f32.mrf.mxu1 }
 0x146   :  { %v3249_v3 = vpop.f32.mrf.mxu0  ;;  %4132 = vst [vmem:[#allocation18_spill] sm:$0xff] %v3269_v30 }
 0x147   :  { %4122 = vst [vmem:[#allocation8_spill] sm:$0xff] %v3249_v3 }
 0x148   :  { %v3251_v9 = vpop.f32.mrf.mxu0 }
 0x149   :  { %4123 = vst [vmem:[#allocation9_spill] sm:$0xff] %v3251_v9 }
 0x14a   :  { %v3253_v10 = vpop.f32.mrf.mxu0 }
 0x14b   :  { %4124 = vst [vmem:[#allocation10_spill] sm:$0xff] %v3253_v10  ;;  %v322_v10 = vpop.f32.mrf.mxu1 }
 0x14c   :  { %v3255_v11 = vpop.f32.mrf.mxu0 }
 0x14d   :  { %4125 = vst [vmem:[#allocation11_spill] sm:$0xff] %v3255_v11 }
 0x14e   :  { %v3257_v14 = vpop.f32.mrf.mxu0 }
 0x14f   :  { %4126 = vst [vmem:[#allocation12_spill] sm:$0xff] %v3257_v14 }
 0x150   :  { %v3259_v16 = vpop.f32.mrf.mxu0 }
 0x151   :  { %4127 = vst [vmem:[#allocation13_spill] sm:$0xff] %v3259_v16  ;;  %v3277_v16 = vpop.f32.mrf.mxu1 }
 0x152   :  { %v3261_v18 = vpop.f32.mrf.mxu0  ;;  %4136 = vst [vmem:[#allocation22_spill] sm:$0xff] %v3277_v16 }
 0x153   :  { %4128 = vst [vmem:[#allocation14_spill] sm:$0xff] %v3261_v18 }
 0x154   :  { %v3263_v21 = vpop.f32.mrf.mxu0 }
 0x155   :  { %4129 = vst [vmem:[#allocation15_spill] sm:$0xff] %v3263_v21  ;;  %v3279_v21 = vpop.f32.mrf.mxu1 }
 0x156   :  { %v3265_v23 = vpop.f32.mrf.mxu0  ;;  %4137 = vst [vmem:[#allocation23_spill] sm:$0xff] %v3279_v21 }
 0x157   :  { %4130 = vst [vmem:[#allocation16_spill] sm:$0xff] %v3265_v23 }
 0x158   :  { %v3267_v25 = vpop.f32.mrf.mxu0 }
 0x159   :  { %4131 = vst [vmem:[#allocation17_spill] sm:$0xff] %v3267_v25  ;;  %v3281_v25 = vpop.f32.mrf.mxu1 }
 0x15a   :  { %v3271_v6 = vpop.f32.mrf.mxu0  ;;  %4138 = vst [vmem:[#allocation24_spill] sm:$0xff] %v3281_v25 }
 0x15b   :  { %4133 = vst [vmem:[#allocation19_spill] sm:$0xff] %v3271_v6  ;;  %v3283_v57 = vpop.f32.mrf.mxu1 }
 0x15c   :  { %v3273_v9 = vpop.f32.mrf.mxu0  ;;  %4139 = vst [vmem:[#allocation25_spill] sm:$0xff] %v3283_v57 }
 0x15d   :  { %4134 = vst [vmem:[#allocation20_spill] sm:$0xff] %v3273_v9  ;;  %v3285_v6 = vpop.f32.mrf.mxu1 }
 0x15e   :  { %v3275_v11 = vpop.f32.mrf.mxu0  ;;  %4140 = vst [vmem:[#allocation26_spill] sm:$0xff] %v3285_v6 }
 0x15f   :  { %4135 = vst [vmem:[#allocation21_spill] sm:$0xff] %v3275_v11 }
 0x160   :  { %v483_v14 = vpop.f32.mrf.mxu0 }
 0x161   :  { %v558_v3 = vadd.f32 %v483_v14, %v209_v62  ;;  %v3287_v62 = vpop.f32.mrf.mxu1 }
 0x162   :  { %v485_v2 = vpop.f32.mrf.mxu0  ;;  %4141 = vst [vmem:[#allocation27_spill] sm:$0xff] %v3287_v62 }
 0x163   :  { %v1855_v18 = vmul.f32 -1.442695, %v558_v3  ;;  %v565_v23 = vadd.f32 %v485_v2, %v211_v1  ;;  %v3292_v1 = vld [vmem:[%s4083_s3] ss:$0 sm:$0xff] }
 0x165   :  { %2415 = vpow2.f32 %v1855_v18  ;;  %v1856_v30 = vmul.f32 -1.442695, %v565_v23 }
 0x167   :  { %2417 = vpow2.f32 %v1856_v30 }
 0x172   :  { %v2416_v9 = vpop.eup %2415 }
 0x173   :  { %v562_v11 = vadd.f32 1.0, %v2416_v9 }
 0x174   :  { %v2418_v16 = vpop.eup %2417 }
 0x175   :  { %2419 = vrcp.f32 %v562_v11  ;;  %v569_v2 = vadd.f32 1.0, %v2418_v16 }
 0x177   :  { %2421 = vrcp.f32 %v569_v2 }
 0x178   :  { %v554_v14 = vpop.f32.mrf.mxu1 }
 0x179   :  { %v572_v18 = vadd.f32 %v3292_v1, %v554_v14 }
 0x17a   :  { %v2128_v3 = vpop.f32.mrf.mxu1 }
 0x182   :  { %v2420_v23 = vpop.eup %2419 }
 0x183   :  { %v573_v30 = vmul.f32 %v2420_v23, %v572_v18  ;;  %v4145_v23 = vld [vmem:[#allocation8_spill] sm:$0xff] }
 0x184   :  { %v2422_v9 = vpop.eup %2421 }
 0x185   :  { %v574_v25 = vadd.f32 %v573_v30, %v322_v10  ;;  %v576_v11 = vsub.f32 1.0, %v2422_v9  ;;  %v578_v3 = vmul.f32 %v2422_v9, %v3084_v48  ;;  %v4142_v10 = vmov 0.0  }
 0x187   :  { %2423 = vtanh.f32 %v574_v25  ;;  %v4144_v25 = vld [vmem:[#allocation7_spill] sm:$0xff] }
 0x194   :  { %v2424_v6 = vpop.eup %2423 }
 0x195   :  { %v577_v62 = vmul.f32 %v2424_v6, %v576_v11  ;;  %v4143_v6 = vld [vmem:[#allocation2_spill] sm:$0xff] }
 0x197   :  { %v3296_v57 = vadd.f32 %v578_v3, %v577_v62 }
 0x199   :  { %645 = vmatmul.mubr.f32.vlgmr.msra.gmra.mxu0 %v3296_v57  ;;  %2162 = vmatmul.mubr.f32.vlgmr.msra.gmra.mxu1 %v3296_v57 }
 0x19a   :  { %744 = vmatpush1.msra.mxu0 %v2780_v63  ;;  %2165 = vmatpush3.msra.mxu1 %v2970_v32 }
 0x19b   :  { %745 = vmatprep.subr.mxu0 %v2787_v0  ;;  %2166 = vmatprep.subr.mxu1 %v4142_v10 }
 0x19c   :  { %746 = vmatpush1.msra.mxu0 %v2794_v4  ;;  %2167 = vmatpush3.msra.mxu1 %v3007_v37 }
 0x19d   :  { %747 = vmatprep.subr.mxu0 %v2803_v5  ;;  %2168 = vmatprep.subr.mxu1 %v4142_v10 }
 0x19e   :  { %748 = vmatpush1.msra.mxu0 %v2809_v7  ;;  %2169 = vmatpush3.msra.mxu1 %v3042_v42 }
 0x19f   :  { %749 = vmatprep.subr.mxu0 %v2818_v8  ;;  %2170 = vmatprep.subr.mxu1 %v4142_v10 }
 0x1a0   :  { %750 = vmatpush1.msra.mxu0 %v2831_v12  ;;  %2171 = vmatpush3.msra.mxu1 %v3077_v47 }
 0x1a1   :  { %751 = vmatprep.subr.mxu0 %v2839_v13  ;;  %2172 = vmatprep.subr.mxu1 %v4142_v10 }
 0x1a2   :  { %752 = vmatpush1.msra.mxu0 %v2852_v15  ;;  %2173 = vmatpush3.msra.mxu1 %v3091_v49 }
 0x1a3   :  { %753 = vmatprep.subr.mxu0 %v2867_v17  ;;  %2174 = vmatprep.subr.mxu1 %v4142_v10 }
 0x1a4   :  { %754 = vmatpush1.msra.mxu0 %v2876_v19  ;;  %2175 = vmatpush3.msra.mxu1 %v3100_v50 }
 0x1a5   :  { %755 = vmatprep.subr.mxu0 %v2887_v20  ;;  %2176 = vmatprep.subr.mxu1 %v4142_v10 }
 0x1a6   :  { %756 = vmatpush1.msra.mxu0 %v2896_v22  ;;  %2177 = vmatpush3.msra.mxu1 %v3109_v51 }
 0x1a7   :  { %757 = vmatprep.subr.mxu0 %v2909_v24  ;;  %2178 = vmatprep.subr.mxu1 %v4142_v10 }
 0x1a8   :  { %758 = vmatpush1.msra.mxu0 %v2924_v26  ;;  %2179 = vmatpush3.msra.mxu1 %v3118_v52 }
 0x1a9   :  { %759 = vmatprep.subr.mxu0 %v2934_v27  ;;  %2180 = vmatprep.subr.mxu1 %v4142_v10 }
 0x1aa   :  { %760 = vmatpush1.msra.mxu0 %v2943_v28  ;;  %2181 = vmatpush3.msra.mxu1 %v3127_v53 }
 0x1ab   :  { %761 = vmatprep.subr.mxu0 %v2950_v29  ;;  %2182 = vmatprep.subr.mxu1 %v4142_v10 }
 0x1ac   :  { %762 = vmatpush1.msra.mxu0 %v2965_v31  ;;  %2183 = vmatpush3.msra.mxu1 %v3136_v54 }
 0x1ad   :  { %763 = vmatprep.subr.mxu0 %v2979_v33  ;;  %2184 = vmatprep.subr.mxu1 %v4142_v10 }
 0x1ae   :  { %764 = vmatpush1.msra.mxu0 %v2986_v34  ;;  %2185 = vmatpush3.msra.mxu1 %v3145_v55 }
 0x1af   :  { %765 = vmatprep.subr.mxu0 %v2992_v35  ;;  %2186 = vmatprep.subr.mxu1 %v4142_v10 }
 0x1b0   :  { %766 = vmatpush1.msra.mxu0 %v3002_v36  ;;  %2187 = vmatpush3.msra.mxu1 %v3154_v56 }
 0x1b1   :  { %767 = vmatprep.subr.mxu0 %v3014_v38  ;;  %2188 = vmatprep.subr.mxu1 %v4142_v10 }
 0x1b2   :  { %768 = vmatpush1.msra.mxu0 %v3020_v39  ;;  %2189 = vmatpush3.msra.mxu1 %v3163_v58 }
 0x1b3   :  { %769 = vmatprep.subr.mxu0 %v3027_v40  ;;  %2190 = vmatprep.subr.mxu1 %v4142_v10 }
 0x1b4   :  { %770 = vmatpush1.msra.mxu0 %v3037_v41  ;;  %2191 = vmatpush3.msra.mxu1 %v3172_v59 }
 0x1b5   :  { %771 = vmatprep.subr.mxu0 %v3049_v43  ;;  %2192 = vmatprep.subr.mxu1 %v4142_v10 }
 0x1b6   :  { %772 = vmatpush1.msra.mxu0 %v3055_v44  ;;  %2193 = vmatpush3.msra.mxu1 %v3181_v60  ;;  %v4146_v60 = vld [vmem:[#allocation18_spill] sm:$0xff] }
 0x1b7   :  { %773 = vmatprep.subr.mxu0 %v3062_v45  ;;  %2194 = vmatprep.subr.mxu1 %v4142_v10 }
 0x1b8   :  { %774 = vmatpush1.msra.mxu0 %v3072_v46  ;;  %807 = vmatprep.mubr.f32.mxu0 %v4142_v10 }
 0x1b9   :  { %2195 = vmatpush3.msra.mxu1 %v3190_v61  ;;  %2196 = vmatprep.mubr.msk.f32.mxu1 %vm2551_vm0, %v4142_v10 }
 0x1ba   :  { %906 = vmatprep.subr.mxu0 %v4143_v6  ;;  %2199 = vmatprep.subr.mxu1 %v4142_v10 }
 0x259   :  { %v646_v48 = vpop.f32.mrf.mxu0  ;;  %v717_v16 = vpop.f32.mrf.mxu1 }
 0x25a   :  { %v721_v62 = vadd.f32 %v646_v48, %v4144_v25  ;;  %v735_v6 = vadd.f32 %v3292_v1, %v717_v16  ;;  %v4152_v16 = vld [vmem:[#allocation9_spill] sm:$0xff] }
 0x25b   :  { %v2163_v14 = vpop.f32.mrf.mxu1  ;;  %v648_v18 = vpop.f32.mrf.mxu0 }
 0x25c   :  { %v1857_v2 = vmul.f32 -1.442695, %v721_v62  ;;  %v728_v30 = vadd.f32 %v648_v18, %v4145_v23 }
 0x25e   :  { %2425 = vpow2.f32 %v1857_v2  ;;  %v1858_v9 = vmul.f32 -1.442695, %v728_v30 }
 0x260   :  { %2427 = vpow2.f32 %v1858_v9 }
 0x26b   :  { %v2426_v11 = vpop.eup %2425 }
 0x26c   :  { %v725_v3 = vadd.f32 1.0, %v2426_v11 }
 0x26d   :  { %v2428_v21 = vpop.eup %2427 }
 0x26e   :  { %2429 = vrcp.f32 %v725_v3  ;;  %v732_v61 = vadd.f32 1.0, %v2428_v21 }
 0x270   :  { %2431 = vrcp.f32 %v732_v61  ;;  %v4151_v61 = vld [vmem:[#allocation2_spill] sm:$0xff] }
 0x27b   :  { %v2430_v46 = vpop.eup %2429 }
 0x27c   :  { %v736_v45 = vmul.f32 %v2430_v46, %v735_v6  ;;  %v4149_v46 = vld [vmem:[#allocation4_spill] sm:$0xff] }
 0x27d   :  { %v2432_v25 = vpop.eup %2431 }
 0x27e   :  { %v737_v48 = vadd.f32 %v4146_v60, %v736_v45  ;;  %v739_v62 = vsub.f32 1.0, %v2432_v25  ;;  %v741_v18 = vmul.f32 %v2432_v25, %v3296_v57  ;;  %v4147_v57 = vld [vmem:[#allocation5_spill] sm:$0xff]  ;;  %v4148_v45 = vld [vmem:[#allocation3_spill] sm:$0xff]  ;;  %v4150_v60 = vld [vmem:[#allocation6_spill] sm:$0xff] }
 0x280   :  { %2433 = vtanh.f32 %v737_v48  ;;  %v4153_v48 = vld [vmem:[#allocation10_spill] sm:$0xff] }
 0x28d   :  { %v2434_v14 = vpop.eup %2433 }
 0x28e   :  { %v740_v2 = vmul.f32 %v2434_v14, %v739_v62 }
 0x290   :  { %v3372_v23 = vadd.f32 %v741_v18, %v740_v2 }
 0x292   :  { %808 = vmatmul.mubr.f32.vlgmr.msra.gmra.mxu0 %v3372_v23  ;;  %2197 = vmatmul.mubr.f32.vlgmr.msra.gmra.mxu1 %v3372_v23 }
 0x293   :  { %907 = vmatpush1.msra.mxu0 %v2780_v63  ;;  %2200 = vmatpush3.msra.mxu1 %v2970_v32 }
 0x294   :  { %908 = vmatprep.subr.mxu0 %v2787_v0  ;;  %2201 = vmatprep.subr.mxu1 %v4142_v10 }
 0x295   :  { %909 = vmatpush1.msra.mxu0 %v2794_v4  ;;  %2202 = vmatpush3.msra.mxu1 %v3007_v37 }
 0x296   :  { %910 = vmatprep.subr.mxu0 %v2803_v5  ;;  %2203 = vmatprep.subr.mxu1 %v4142_v10 }
 0x297   :  { %911 = vmatpush1.msra.mxu0 %v2809_v7  ;;  %2204 = vmatpush3.msra.mxu1 %v3042_v42 }
 0x298   :  { %912 = vmatprep.subr.mxu0 %v2818_v8  ;;  %2205 = vmatprep.subr.mxu1 %v4142_v10 }
 0x299   :  { %913 = vmatpush1.msra.mxu0 %v2831_v12  ;;  %2206 = vmatpush3.msra.mxu1 %v3077_v47 }
 0x29a   :  { %914 = vmatprep.subr.mxu0 %v2839_v13  ;;  %2207 = vmatprep.subr.mxu1 %v4142_v10 }
 0x29b   :  { %915 = vmatpush1.msra.mxu0 %v2852_v15  ;;  %2208 = vmatpush3.msra.mxu1 %v3091_v49 }
 0x29c   :  { %916 = vmatprep.subr.mxu0 %v2867_v17  ;;  %2209 = vmatprep.subr.mxu1 %v4142_v10 }
 0x29d   :  { %917 = vmatpush1.msra.mxu0 %v2876_v19  ;;  %2210 = vmatpush3.msra.mxu1 %v3100_v50 }
 0x29e   :  { %918 = vmatprep.subr.mxu0 %v2887_v20  ;;  %2211 = vmatprep.subr.mxu1 %v4142_v10 }
 0x29f   :  { %919 = vmatpush1.msra.mxu0 %v2896_v22  ;;  %2212 = vmatpush3.msra.mxu1 %v3109_v51 }
 0x2a0   :  { %920 = vmatprep.subr.mxu0 %v2909_v24  ;;  %2213 = vmatprep.subr.mxu1 %v4142_v10 }
 0x2a1   :  { %921 = vmatpush1.msra.mxu0 %v2924_v26  ;;  %2214 = vmatpush3.msra.mxu1 %v3118_v52 }
 0x2a2   :  { %922 = vmatprep.subr.mxu0 %v2934_v27  ;;  %2215 = vmatprep.subr.mxu1 %v4142_v10 }
 0x2a3   :  { %923 = vmatpush1.msra.mxu0 %v2943_v28  ;;  %2216 = vmatpush3.msra.mxu1 %v3127_v53 }
 0x2a4   :  { %924 = vmatprep.subr.mxu0 %v2950_v29  ;;  %2217 = vmatprep.subr.mxu1 %v4142_v10 }
 0x2a5   :  { %925 = vmatpush1.msra.mxu0 %v2965_v31  ;;  %2218 = vmatpush3.msra.mxu1 %v3136_v54 }
 0x2a6   :  { %926 = vmatprep.subr.mxu0 %v2979_v33  ;;  %2219 = vmatprep.subr.mxu1 %v4142_v10 }
 0x2a7   :  { %927 = vmatpush1.msra.mxu0 %v2986_v34  ;;  %2220 = vmatpush3.msra.mxu1 %v3145_v55 }
 0x2a8   :  { %928 = vmatprep.subr.mxu0 %v2992_v35  ;;  %2221 = vmatprep.subr.mxu1 %v4142_v10 }
 0x2a9   :  { %929 = vmatpush1.msra.mxu0 %v3002_v36  ;;  %2222 = vmatpush3.msra.mxu1 %v3154_v56 }
 0x2aa   :  { %930 = vmatprep.subr.mxu0 %v3014_v38  ;;  %2223 = vmatprep.subr.mxu1 %v4142_v10 }
 0x2ab   :  { %931 = vmatpush1.msra.mxu0 %v3020_v39  ;;  %2224 = vmatpush3.msra.mxu1 %v3163_v58 }
 0x2ac   :  { %932 = vmatprep.subr.mxu0 %v3027_v40  ;;  %2225 = vmatprep.subr.mxu1 %v4142_v10 }
 0x2ad   :  { %933 = vmatpush1.msra.mxu0 %v3037_v41  ;;  %2226 = vmatpush3.msra.mxu1 %v3172_v59 }
 0x2ae   :  { %934 = vmatprep.subr.mxu0 %v3049_v43  ;;  %2227 = vmatprep.subr.mxu1 %v4142_v10 }
 0x2af   :  { %935 = vmatpush1.msra.mxu0 %v3055_v44  ;;  %2228 = vmatpush3.msra.mxu1 %v4147_v57  ;;  %v4154_v57 = vld [vmem:[#allocation23_spill] sm:$0xff] }
 0x2b0   :  { %936 = vmatprep.subr.mxu0 %v4148_v45  ;;  %2229 = vmatprep.subr.mxu1 %v4142_v10 }
 0x2b1   :  { %937 = vmatpush1.msra.mxu0 %v4149_v46  ;;  %970 = vmatprep.mubr.f32.mxu0 %v4142_v10 }
 0x2b2   :  { %2230 = vmatpush3.msra.mxu1 %v4150_v60  ;;  %2231 = vmatprep.mubr.msk.f32.mxu1 %vm2551_vm0, %v4142_v10 }
 0x2b3   :  { %1069 = vmatprep.subr.mxu0 %v4151_v61  ;;  %2234 = vmatprep.subr.mxu1 %v4142_v10 }
 0x352   :  { %v809_v21 = vpop.f32.mrf.mxu0  ;;  %v880_v6 = vpop.f32.mrf.mxu1 }
 0x353   :  { %v884_v30 = vadd.f32 %v809_v21, %v4152_v16  ;;  %v898_v61 = vadd.f32 %v3292_v1, %v880_v6  ;;  %v3578_v6 = vld [vmem:[%s4081_s2 + $0x120] sm:$0xff] }
 0x354   :  { %v2198_v9 = vpop.f32.mrf.mxu1  ;;  %v811_v3 = vpop.f32.mrf.mxu0 }
 0x355   :  { %v1859_v11 = vmul.f32 -1.442695, %v884_v30  ;;  %v891_v25 = vadd.f32 %v811_v3, %v4153_v48 }
 0x357   :  { %2435 = vpow2.f32 %v1859_v11  ;;  %v1860_v62 = vmul.f32 -1.442695, %v891_v25  ;;  %v3592_v25 = vld [vmem:[%s4081_s2 + $0x108] sm:$0xff] }
 0x359   :  { %2437 = vpow2.f32 %v1860_v62  ;;  %v3606_v62 = vld [vmem:[%s4081_s2 + $0xf0] sm:$0xff] }
 0x364   :  { %v2436_v14 = vpop.eup %2435 }
 0x365   :  { %v888_v2 = vadd.f32 1.0, %v2436_v14  ;;  %v3620_v14 = vld [vmem:[%s4081_s2 + $0xd8] sm:$0xff] }
 0x366   :  { %v2438_v18 = vpop.eup %2437 }
 0x367   :  { %2439 = vrcp.f32 %v888_v2  ;;  %v895_v60 = vadd.f32 1.0, %v2438_v18  ;;  %v3634_v2 = vld [vmem:[%s4081_s2 + $0xc0] sm:$0xff]  ;;  %v3648_v18 = vld [vmem:[%s4081_s2 + $0xa8] sm:$0xff] }
 0x369   :  { %2441 = vrcp.f32 %v895_v60  ;;  %v3564_v60 = vld [vmem:[%s4081_s2 + $0x138] sm:$0xff] }
 0x374   :  { %v2440_v46 = vpop.eup %2439 }
 0x375   :  { %v899_v45 = vmul.f32 %v2440_v46, %v898_v61  ;;  %v3550_v46 = vld [vmem:[%s4081_s2 + $0x150] sm:$0xff] }
 0x376   :  { %v2442_v16 = vpop.eup %2441  ;;  %v3662_v61 = vld [vmem:[%s4081_s2 + $0x90] sm:$0xff] }
 0x377   :  { %v900_v21 = vadd.f32 %v899_v45, %v4154_v57  ;;  %v902_v30 = vsub.f32 1.0, %v2442_v16  ;;  %v904_v3 = vmul.f32 %v2442_v16, %v3372_v23  ;;  %v3536_v57 = vld [vmem:[%s4081_s2 + $0x168] sm:$0xff]  ;;  %v3543_v45 = vld [vmem:[%s4081_s2 + $0x158] sm:$0xff]  ;;  %v3690_v16 = vld [vmem:[%s4081_s2 + $0x60] sm:$0xff] }
 0x379   :  { %2443 = vtanh.f32 %v900_v21  ;;  %v3676_v21 = vld [vmem:[%s4081_s2 + $0x78] sm:$0xff] }
 0x386   :  { %v2444_v9 = vpop.eup %2443 }
 0x387   :  { %v903_v11 = vmul.f32 %v2444_v9, %v902_v30  ;;  %v3704_v30 = vld [vmem:[%s4081_s2 + $0x48] sm:$0xff]  ;;  %v3718_v9 = vld [vmem:[%s4081_s2 + $0x30] sm:$0xff] }
 0x389   :  { %v3448_v48 = vadd.f32 %v904_v3, %v903_v11  ;;  %v3732_v11 = vld [vmem:[%s4081_s2 + $0x18] sm:$0xff]  ;;  %v3746_v3 = vld [vmem:[%s4081_s2] sm:$0xff] }
 0x38a   :  { %4163 = vst [vmem:[#allocation8_spill] sm:$0xff] %v3746_v3 }
 0x38b   :  { %971 = vmatmul.mubr.f32.vlgmr.msra.gmra.mxu0 %v3448_v48  ;;  %2232 = vmatmul.mubr.f32.vlgmr.msra.gmra.mxu1 %v3448_v48 }
 0x38c   :  { %1070 = vmatpush1.msra.mxu0 %v2780_v63  ;;  %2235 = vmatpush3.msra.mxu1 %v2970_v32  ;;  %v4155_v63 = vld [vmem:[#allocation5_spill] sm:$0xff] }
 0x38d   :  { %1071 = vmatprep.subr.mxu0 %v2787_v0  ;;  %2236 = vmatprep.subr.mxu1 %v4142_v10  ;;  %v4156_v0 = vld [vmem:[#allocation3_spill] sm:$0xff] }
 0x38e   :  { %1072 = vmatpush1.msra.mxu0 %v2794_v4  ;;  %2237 = vmatpush3.msra.mxu1 %v3007_v37  ;;  %v4157_v4 = vld [vmem:[#allocation4_spill] sm:$0xff] }
 0x38f   :  { %1073 = vmatprep.subr.mxu0 %v2803_v5  ;;  %2238 = vmatprep.subr.mxu1 %v4142_v10  ;;  %v4158_v5 = vld [vmem:[#allocation6_spill] sm:$0xff] }
 0x390   :  { %1074 = vmatpush1.msra.mxu0 %v2809_v7  ;;  %2239 = vmatpush3.msra.mxu1 %v3042_v42  ;;  %v3520_v7 = vld [vmem:[%s4081_s2 + $0x170] sm:$0xff] }
 0x391   :  { %1075 = vmatprep.subr.mxu0 %v2818_v8  ;;  %2240 = vmatprep.subr.mxu1 %v4142_v10 }
 0x392   :  { %1076 = vmatpush1.msra.mxu0 %v2831_v12  ;;  %2241 = vmatpush3.msra.mxu1 %v3077_v47 }
 0x393   :  { %1077 = vmatprep.subr.mxu0 %v2839_v13  ;;  %2242 = vmatprep.subr.mxu1 %v4142_v10  ;;  %v4159_v13 = vld [vmem:[#allocation11_spill] sm:$0xff] }
 0x394   :  { %1078 = vmatpush1.msra.mxu0 %v2852_v15  ;;  %2243 = vmatpush3.msra.mxu1 %v3091_v49 }
 0x395   :  { %1079 = vmatprep.subr.mxu0 %v2867_v17  ;;  %2244 = vmatprep.subr.mxu1 %v4142_v10 }
 0x396   :  { %1080 = vmatpush1.msra.mxu0 %v2876_v19  ;;  %2245 = vmatpush3.msra.mxu1 %v3100_v50 }
 0x397   :  { %1081 = vmatprep.subr.mxu0 %v2887_v20  ;;  %2246 = vmatprep.subr.mxu1 %v4142_v10 }
 0x398   :  { %1082 = vmatpush1.msra.mxu0 %v2896_v22  ;;  %2247 = vmatpush3.msra.mxu1 %v3109_v51  ;;  %v4160_v22 = vld [vmem:[#allocation12_spill] sm:$0xff] }
 0x399   :  { %1083 = vmatprep.subr.mxu0 %v2909_v24  ;;  %2248 = vmatprep.subr.mxu1 %v4142_v10 }
 0x39a   :  { %1084 = vmatpush1.msra.mxu0 %v2924_v26  ;;  %2249 = vmatpush3.msra.mxu1 %v3118_v52 }
 0x39b   :  { %1085 = vmatprep.subr.mxu0 %v2934_v27  ;;  %2250 = vmatprep.subr.mxu1 %v4142_v10 }
 0x39c   :  { %1086 = vmatpush1.msra.mxu0 %v2943_v28  ;;  %2251 = vmatpush3.msra.mxu1 %v3127_v53 }
 0x39d   :  { %1087 = vmatprep.subr.mxu0 %v2950_v29  ;;  %2252 = vmatprep.subr.mxu1 %v4142_v10 }
 0x39e   :  { %1088 = vmatpush1.msra.mxu0 %v2965_v31  ;;  %2253 = vmatpush3.msra.mxu1 %v3136_v54 }
 0x39f   :  { %1089 = vmatprep.subr.mxu0 %v2979_v33  ;;  %2254 = vmatprep.subr.mxu1 %v4142_v10 }
 0x3a0   :  { %1090 = vmatpush1.msra.mxu0 %v2986_v34  ;;  %2255 = vmatpush3.msra.mxu1 %v3145_v55 }
 0x3a1   :  { %1091 = vmatprep.subr.mxu0 %v2992_v35  ;;  %2256 = vmatprep.subr.mxu1 %v4142_v10 }
 0x3a2   :  { %1092 = vmatpush1.msra.mxu0 %v3002_v36  ;;  %2257 = vmatpush3.msra.mxu1 %v3154_v56  ;;  %v4161_v36 = vld [vmem:[#allocation22_spill] sm:$0xff] }
 0x3a3   :  { %1093 = vmatprep.subr.mxu0 %v3014_v38  ;;  %2258 = vmatprep.subr.mxu1 %v4142_v10 }
 0x3a4   :  { %1094 = vmatpush1.msra.mxu0 %v3020_v39  ;;  %2259 = vmatpush3.msra.mxu1 %v3163_v58 }
 0x3a5   :  { %1095 = vmatprep.subr.mxu0 %v3027_v40  ;;  %2260 = vmatprep.subr.mxu1 %v4142_v10 }
 0x3a6   :  { %1096 = vmatpush1.msra.mxu0 %v3037_v41  ;;  %2261 = vmatpush3.msra.mxu1 %v3172_v59 }
 0x3a7   :  { %1097 = vmatprep.subr.mxu0 %v3049_v43  ;;  %2262 = vmatprep.subr.mxu1 %v4142_v10 }
 0x3a8   :  { %1098 = vmatpush1.msra.mxu0 %v3055_v44  ;;  %2263 = vmatpush3.msra.mxu1 %v4155_v63 }
 0x3a9   :  { %1099 = vmatprep.subr.mxu0 %v4156_v0  ;;  %2264 = vmatprep.subr.mxu1 %v4142_v10  ;;  %v4164_v0 = vld [vmem:[#allocation13_spill] sm:$0xff] }
 0x3aa   :  { %1100 = vmatpush1.msra.mxu0 %v4157_v4  ;;  %1133 = vmatprep.mubr.f32.mxu0 %v4142_v10 }
 0x3ab   :  { %2265 = vmatpush3.msra.mxu1 %v4158_v5  ;;  %2266 = vmatprep.mubr.msk.f32.mxu1 %vm2551_vm0, %v4142_v10 }
 0x3ac   :  { %1232 = vmatprep.subr.mxu0 %v3520_v7  ;;  %2269 = vmatprep.subr.mxu1 %v4142_v10 }
 0x44b   :  { %v972_v8 = vpop.f32.mrf.mxu0  ;;  %v1043_v12 = vpop.f32.mrf.mxu1 }
 0x44c   :  { %v1047_v15 = vadd.f32 %v972_v8, %v4159_v13  ;;  %v1061_v33 = vadd.f32 %v3292_v1, %v1043_v12 }
 0x44d   :  { %v2233_v17 = vpop.f32.mrf.mxu1  ;;  %v974_v20 = vpop.f32.mrf.mxu0 }
 0x44e   :  { %v1861_v19 = vmul.f32 -1.442695, %v1047_v15  ;;  %v1054_v24 = vadd.f32 %v974_v20, %v4160_v22  ;;  %v4165_v15 = vld [vmem:[#allocation14_spill] sm:$0xff] }
 0x450   :  { %2445 = vpow2.f32 %v1861_v19  ;;  %v1862_v26 = vmul.f32 -1.442695, %v1054_v24 }
 0x452   :  { %2447 = vpow2.f32 %v1862_v26 }
 0x45d   :  { %v2446_v27 = vpop.eup %2445 }
 0x45e   :  { %v1051_v28 = vadd.f32 1.0, %v2446_v27 }
 0x45f   :  { %v2448_v29 = vpop.eup %2447 }
 0x460   :  { %2449 = vrcp.f32 %v1051_v28  ;;  %v1058_v31 = vadd.f32 1.0, %v2448_v29  ;;  %v4166_v29 = vld [vmem:[#allocation25_spill] sm:$0xff] }
 0x462   :  { %2451 = vrcp.f32 %v1058_v31 }
 0x46d   :  { %v2450_v34 = vpop.eup %2449 }
 0x46e   :  { %v1062_v35 = vmul.f32 %v2450_v34, %v1061_v33 }
 0x46f   :  { %v2452_v39 = vpop.eup %2451 }
 0x470   :  { %v1063_v38 = vadd.f32 %v4161_v36, %v1062_v35  ;;  %v1065_v40 = vsub.f32 1.0, %v2452_v39  ;;  %v1067_v44 = vmul.f32 %v2452_v39, %v3448_v48 }
 0x472   :  { %2453 = vtanh.f32 %v1063_v38 }
 0x47f   :  { %v2454_v41 = vpop.eup %2453 }
 0x480   :  { %v1066_v43 = vmul.f32 %v2454_v41, %v1065_v40  ;;  %v3768_v40 = vld [vmem:[%s4081_s2 + $0x178] sm:$0xff]  ;;  %v3777_v41 = vld [vmem:[%s4081_s2 + $0x160] sm:$0xff] }
 0x482   :  { %v3529_v23 = vadd.f32 %v1067_v44, %v1066_v43  ;;  %v3786_v43 = vld [vmem:[%s4081_s2 + $0x148] sm:$0xff]  ;;  %v3795_v44 = vld [vmem:[%s4081_s2 + $0x130] sm:$0xff] }
 0x484   :  { %1134 = vmatmul.mubr.f32.vlgmr.msra.gmra.mxu0 %v3529_v23  ;;  %2267 = vmatmul.mubr.f32.vlgmr.msra.gmra.mxu1 %v3529_v23 }
 0x485   :  { %1233 = vmatpush1.msra.mxu0 %v3536_v57  ;;  %2270 = vmatpush3.msra.mxu1 %v2970_v32  ;;  %v3557_v32 = vld [vmem:[%s4081_s2 + $0x140] sm:$0xff] }
 0x486   :  { %1234 = vmatprep.subr.mxu0 %v3543_v45  ;;  %2271 = vmatprep.subr.mxu1 %v4142_v10 }
 0x487   :  { %1235 = vmatpush1.msra.mxu0 %v3550_v46  ;;  %2272 = vmatpush3.msra.mxu1 %v3007_v37  ;;  %v3571_v37 = vld [vmem:[%s4081_s2 + $0x128] sm:$0xff] }
 0x488   :  { %1236 = vmatprep.subr.mxu0 %v3557_v32  ;;  %2273 = vmatprep.subr.mxu1 %v4142_v10 }
 0x489   :  { %1237 = vmatpush1.msra.mxu0 %v3564_v60  ;;  %2274 = vmatpush3.msra.mxu1 %v3042_v42  ;;  %v3585_v42 = vld [vmem:[%s4081_s2 + $0x110] sm:$0xff] }
 0x48a   :  { %1238 = vmatprep.subr.mxu0 %v3571_v37  ;;  %2275 = vmatprep.subr.mxu1 %v4142_v10 }
 0x48b   :  { %1239 = vmatpush1.msra.mxu0 %v3578_v6  ;;  %2276 = vmatpush3.msra.mxu1 %v3077_v47  ;;  %v3599_v47 = vld [vmem:[%s4081_s2 + $0xf8] sm:$0xff] }
 0x48c   :  { %1240 = vmatprep.subr.mxu0 %v3585_v42  ;;  %2277 = vmatprep.subr.mxu1 %v4142_v10 }
 0x48d   :  { %1241 = vmatpush1.msra.mxu0 %v3592_v25  ;;  %2278 = vmatpush3.msra.mxu1 %v3091_v49  ;;  %v3613_v49 = vld [vmem:[%s4081_s2 + $0xe0] sm:$0xff] }
 0x48e   :  { %1242 = vmatprep.subr.mxu0 %v3599_v47  ;;  %2279 = vmatprep.subr.mxu1 %v4142_v10 }
 0x48f   :  { %1243 = vmatpush1.msra.mxu0 %v3606_v62  ;;  %2280 = vmatpush3.msra.mxu1 %v3100_v50  ;;  %v3627_v50 = vld [vmem:[%s4081_s2 + $0xc8] sm:$0xff] }
 0x490   :  { %1244 = vmatprep.subr.mxu0 %v3613_v49  ;;  %2281 = vmatprep.subr.mxu1 %v4142_v10 }
 0x491   :  { %1245 = vmatpush1.msra.mxu0 %v3620_v14  ;;  %2282 = vmatpush3.msra.mxu1 %v3109_v51  ;;  %v3641_v51 = vld [vmem:[%s4081_s2 + $0xb0] sm:$0xff] }
 0x492   :  { %1246 = vmatprep.subr.mxu0 %v3627_v50  ;;  %2283 = vmatprep.subr.mxu1 %v4142_v10 }
 0x493   :  { %1247 = vmatpush1.msra.mxu0 %v3634_v2  ;;  %2284 = vmatpush3.msra.mxu1 %v3118_v52  ;;  %v3655_v52 = vld [vmem:[%s4081_s2 + $0x98] sm:$0xff] }
 0x494   :  { %1248 = vmatprep.subr.mxu0 %v3641_v51  ;;  %2285 = vmatprep.subr.mxu1 %v4142_v10 }
 0x495   :  { %1249 = vmatpush1.msra.mxu0 %v3648_v18  ;;  %2286 = vmatpush3.msra.mxu1 %v3127_v53  ;;  %v3669_v53 = vld [vmem:[%s4081_s2 + $0x80] sm:$0xff] }
 0x496   :  { %1250 = vmatprep.subr.mxu0 %v3655_v52  ;;  %2287 = vmatprep.subr.mxu1 %v4142_v10 }
 0x497   :  { %1251 = vmatpush1.msra.mxu0 %v3662_v61  ;;  %2288 = vmatpush3.msra.mxu1 %v3136_v54  ;;  %v3683_v54 = vld [vmem:[%s4081_s2 + $0x68] sm:$0xff] }
 0x498   :  { %1252 = vmatprep.subr.mxu0 %v3669_v53  ;;  %2289 = vmatprep.subr.mxu1 %v4142_v10 }
 0x499   :  { %1253 = vmatpush1.msra.mxu0 %v3676_v21  ;;  %2290 = vmatpush3.msra.mxu1 %v3145_v55  ;;  %v3697_v55 = vld [vmem:[%s4081_s2 + $0x50] sm:$0xff] }
 0x49a   :  { %1254 = vmatprep.subr.mxu0 %v3683_v54  ;;  %2291 = vmatprep.subr.mxu1 %v4142_v10 }
 0x49b   :  { %1255 = vmatpush1.msra.mxu0 %v3690_v16  ;;  %2292 = vmatpush3.msra.mxu1 %v3154_v56  ;;  %v3711_v56 = vld [vmem:[%s4081_s2 + $0x38] sm:$0xff] }
 0x49c   :  { %1256 = vmatprep.subr.mxu0 %v3697_v55  ;;  %2293 = vmatprep.subr.mxu1 %v4142_v10 }
 0x49d   :  { %1257 = vmatpush1.msra.mxu0 %v3704_v30  ;;  %2294 = vmatpush3.msra.mxu1 %v3163_v58  ;;  %v3725_v58 = vld [vmem:[%s4081_s2 + $0x20] sm:$0xff] }
 0x49e   :  { %1258 = vmatprep.subr.mxu0 %v3711_v56  ;;  %2295 = vmatprep.subr.mxu1 %v4142_v10 }
 0x49f   :  { %1259 = vmatpush1.msra.mxu0 %v3718_v9  ;;  %2296 = vmatpush3.msra.mxu1 %v3172_v59  ;;  %v3739_v59 = vld [vmem:[%s4081_s2 + $0x8] sm:$0xff] }
 0x4a0   :  { %1260 = vmatprep.subr.mxu0 %v3725_v58  ;;  %2297 = vmatprep.subr.mxu1 %v4142_v10  ;;  %4162 = vst [vmem:[#allocation7_spill] sm:$0xff] %v3739_v59 }
 0x4a1   :  { %1261 = vmatpush1.msra.mxu0 %v3732_v11  ;;  %2298 = vmatpush3.msra.mxu1 %v4155_v63 }
 0x4a2   :  { %1262 = vmatprep.subr.mxu0 %v3739_v59  ;;  %2299 = vmatprep.subr.mxu1 %v4142_v10 }
 0x4a3   :  { %1263 = vmatpush1.msra.mxu0 %v3746_v3  ;;  %1296 = vmatprep.mubr.f32.mxu0 %v4142_v10 }
 0x4a4   :  { %2300 = vmatpush3.msra.mxu1 %v4158_v5  ;;  %2301 = vmatprep.mubr.msk.f32.mxu1 %vm2551_vm0, %v4142_v10 }
 0x4a5   :  { %1395 = vmatprep.subr.mxu0 %v3520_v7  ;;  %2304 = vmatprep.subr.mxu1 %v4142_v10 }
 0x544   :  { %v1135_v48 = vpop.f32.mrf.mxu0  ;;  %v1206_v63 = vpop.f32.mrf.mxu1 }
 0x545   :  { %v1210_v4 = vadd.f32 %v1135_v48, %v4164_v0  ;;  %v1224_v26 = vadd.f32 %v3292_v1, %v1206_v63  ;;  %v3813_v48 = vld [vmem:[%s4081_s2 + $0x100] sm:$0xff]  ;;  %v3822_v63 = vld [vmem:[%s4081_s2 + $0xe8] sm:$0xff]  ;;  %v3831_v0 = vld [vmem:[%s4081_s2 + $0xd0] sm:$0xff] }
 0x546   :  { %v2268_v8 = vpop.f32.mrf.mxu1  ;;  %v1137_v13 = vpop.f32.mrf.mxu0 }
 0x547   :  { %v1863_v12 = vmul.f32 -1.442695, %v1210_v4  ;;  %v1217_v17 = vadd.f32 %v1137_v13, %v4165_v15  ;;  %v3840_v4 = vld [vmem:[%s4081_s2 + $0xb8] sm:$0xff]  ;;  %v3849_v8 = vld [vmem:[%s4081_s2 + $0xa0] sm:$0xff]  ;;  %v3867_v13 = vld [vmem:[%s4081_s2 + $0x70] sm:$0xff] }
 0x548   :  { %v3876_v15 = vld [vmem:[%s4081_s2 + $0x58] sm:$0xff] }
 0x549   :  { %2455 = vpow2.f32 %v1863_v12  ;;  %v1864_v19 = vmul.f32 -1.442695, %v1217_v17  ;;  %v3858_v12 = vld [vmem:[%s4081_s2 + $0x88] sm:$0xff]  ;;  %v3885_v17 = vld [vmem:[%s4081_s2 + $0x40] sm:$0xff] }
 0x54b   :  { %2457 = vpow2.f32 %v1864_v19  ;;  %v3894_v19 = vld [vmem:[%s4081_s2 + $0x28] sm:$0xff] }
 0x54c   :  { %4167 = vst [vmem:[#allocation18_spill] sm:$0xff] %v3894_v19 }
 0x556   :  { %v2456_v5 = vpop.eup %2455 }
 0x557   :  { %v1214_v20 = vadd.f32 1.0, %v2456_v5  ;;  %v3904_v5 = vld [vmem:[%s4081_s2 + $0x10] sm:$0xff] }
 0x558   :  { %v2458_v22 = vpop.eup %2457  ;;  %4168 = vst [vmem:[#allocation2_spill] sm:$0xff] %v3904_v5 }
 0x559   :  { %2459 = vrcp.f32 %v1214_v20  ;;  %v1221_v24 = vadd.f32 1.0, %v2458_v22 }
 0x55b   :  { %2461 = vrcp.f32 %v1221_v24  ;;  %v4169_v24 = vld [vmem:[#allocation15_spill] sm:$0xff] }
 0x566   :  { %v2460_v27 = vpop.eup %2459 }
 0x567   :  { %v1225_v28 = vmul.f32 %v2460_v27, %v1224_v26 }
 0x568   :  { %v2462_v33 = vpop.eup %2461 }
 0x569   :  { %v1226_v31 = vadd.f32 %v1225_v28, %v4166_v29  ;;  %v1228_v34 = vsub.f32 1.0, %v2462_v33  ;;  %v1230_v38 = vmul.f32 %v2462_v33, %v3529_v23  ;;  %v3804_v23 = vld [vmem:[%s4081_s2 + $0x118] sm:$0xff] }
 0x56b   :  { %2463 = vtanh.f32 %v1226_v31  ;;  %v4170_v31 = vld [vmem:[#allocation16_spill] sm:$0xff] }
 0x578   :  { %v2464_v35 = vpop.eup %2463 }
 0x579   :  { %v1229_v36 = vmul.f32 %v2464_v35, %v1228_v34 }
 0x57b   :  { %v3760_v39 = vadd.f32 %v1230_v38, %v1229_v36 }
 0x57d   :  { %1297 = vmatmul.mubr.f32.vlgmr.msra.gmra.mxu0 %v3760_v39  ;;  %2302 = vmatmul.mubr.f32.vlgmr.msra.gmra.mxu1 %v3760_v39 }
 0x57e   :  { %1396 = vmatpush1.msra.mxu0 %v3536_v57  ;;  %2305 = vmatpush3.msra.mxu1 %v3768_v40 }
 0x57f   :  { %1397 = vmatprep.subr.mxu0 %v3543_v45  ;;  %2306 = vmatprep.subr.mxu1 %v4142_v10 }
 0x580   :  { %1398 = vmatpush1.msra.mxu0 %v3550_v46  ;;  %2307 = vmatpush3.msra.mxu1 %v3777_v41 }
 0x581   :  { %1399 = vmatprep.subr.mxu0 %v3557_v32  ;;  %2308 = vmatprep.subr.mxu1 %v4142_v10 }
 0x582   :  { %1400 = vmatpush1.msra.mxu0 %v3564_v60  ;;  %2309 = vmatpush3.msra.mxu1 %v3786_v43 }
 0x583   :  { %1401 = vmatprep.subr.mxu0 %v3571_v37  ;;  %2310 = vmatprep.subr.mxu1 %v4142_v10 }
 0x584   :  { %1402 = vmatpush1.msra.mxu0 %v3578_v6  ;;  %2311 = vmatpush3.msra.mxu1 %v3795_v44 }
 0x585   :  { %1403 = vmatprep.subr.mxu0 %v3585_v42  ;;  %2312 = vmatprep.subr.mxu1 %v4142_v10 }
 0x586   :  { %1404 = vmatpush1.msra.mxu0 %v3592_v25  ;;  %2313 = vmatpush3.msra.mxu1 %v3804_v23 }
 0x587   :  { %1405 = vmatprep.subr.mxu0 %v3599_v47  ;;  %2314 = vmatprep.subr.mxu1 %v4142_v10 }
 0x588   :  { %1406 = vmatpush1.msra.mxu0 %v3606_v62  ;;  %2315 = vmatpush3.msra.mxu1 %v3813_v48 }
 0x589   :  { %1407 = vmatprep.subr.mxu0 %v3613_v49  ;;  %2316 = vmatprep.subr.mxu1 %v4142_v10 }
 0x58a   :  { %1408 = vmatpush1.msra.mxu0 %v3620_v14  ;;  %2317 = vmatpush3.msra.mxu1 %v3822_v63 }
 0x58b   :  { %1409 = vmatprep.subr.mxu0 %v3627_v50  ;;  %2318 = vmatprep.subr.mxu1 %v4142_v10 }
 0x58c   :  { %1410 = vmatpush1.msra.mxu0 %v3634_v2  ;;  %2319 = vmatpush3.msra.mxu1 %v3831_v0 }
 0x58d   :  { %1411 = vmatprep.subr.mxu0 %v3641_v51  ;;  %2320 = vmatprep.subr.mxu1 %v4142_v10 }
 0x58e   :  { %1412 = vmatpush1.msra.mxu0 %v3648_v18  ;;  %2321 = vmatpush3.msra.mxu1 %v3840_v4 }
 0x58f   :  { %1413 = vmatprep.subr.mxu0 %v3655_v52  ;;  %2322 = vmatprep.subr.mxu1 %v4142_v10 }
 0x590   :  { %1414 = vmatpush1.msra.mxu0 %v3662_v61  ;;  %2323 = vmatpush3.msra.mxu1 %v3849_v8 }
 0x591   :  { %1415 = vmatprep.subr.mxu0 %v3669_v53  ;;  %2324 = vmatprep.subr.mxu1 %v4142_v10 }
 0x592   :  { %1416 = vmatpush1.msra.mxu0 %v3676_v21  ;;  %2325 = vmatpush3.msra.mxu1 %v3858_v12 }
 0x593   :  { %1417 = vmatprep.subr.mxu0 %v3683_v54  ;;  %2326 = vmatprep.subr.mxu1 %v4142_v10 }
 0x594   :  { %1418 = vmatpush1.msra.mxu0 %v3690_v16  ;;  %2327 = vmatpush3.msra.mxu1 %v3867_v13 }
 0x595   :  { %1419 = vmatprep.subr.mxu0 %v3697_v55  ;;  %2328 = vmatprep.subr.mxu1 %v4142_v10 }
 0x596   :  { %1420 = vmatpush1.msra.mxu0 %v3704_v30  ;;  %2329 = vmatpush3.msra.mxu1 %v3876_v15 }
 0x597   :  { %1421 = vmatprep.subr.mxu0 %v3711_v56  ;;  %2330 = vmatprep.subr.mxu1 %v4142_v10 }
 0x598   :  { %1422 = vmatpush1.msra.mxu0 %v3718_v9  ;;  %2331 = vmatpush3.msra.mxu1 %v3885_v17 }
 0x599   :  { %1423 = vmatprep.subr.mxu0 %v3725_v58  ;;  %2332 = vmatprep.subr.mxu1 %v4142_v10 }
 0x59a   :  { %1424 = vmatpush1.msra.mxu0 %v3732_v11  ;;  %2333 = vmatpush3.msra.mxu1 %v3894_v19  ;;  %v4171_v19 = vld [vmem:[#allocation24_spill] sm:$0xff] }
 0x59b   :  { %1425 = vmatprep.subr.mxu0 %v3739_v59  ;;  %2334 = vmatprep.subr.mxu1 %v4142_v10 }
 0x59c   :  { %1426 = vmatpush1.msra.mxu0 %v3746_v3  ;;  %1459 = vmatprep.mubr.f32.mxu0 %v4142_v10 }
 0x59d   :  { %2335 = vmatpush3.msra.mxu1 %v3904_v5  ;;  %2336 = vmatprep.mubr.msk.f32.mxu1 %vm2551_vm0, %v4142_v10 }
 0x59e   :  { %1558 = vmatprep.subr.mxu0 %v3520_v7  ;;  %2339 = vmatprep.subr.mxu1 %v4142_v10 }
 0x63d   :  { %v1298_v20 = vpop.f32.mrf.mxu0  ;;  %v1369_v22 = vpop.f32.mrf.mxu1 }
 0x63e   :  { %v1373_v26 = vadd.f32 %v1298_v20, %v4169_v24  ;;  %v1387_v7 = vadd.f32 %v3292_v1, %v1369_v22  ;;  %v4172_v1 = vld [vmem:[#allocation18_spill] sm:$0xff] }
 0x63f   :  { %v2303_v27 = vpop.f32.mrf.mxu1  ;;  %v1300_v29 = vpop.f32.mrf.mxu0 }
 0x640   :  { %v1865_v28 = vmul.f32 -1.442695, %v1373_v26  ;;  %v1380_v33 = vadd.f32 %v1300_v29, %v4170_v31 }
 0x642   :  { %2465 = vpow2.f32 %v1865_v28  ;;  %v1866_v34 = vmul.f32 -1.442695, %v1380_v33 }
 0x644   :  { %2467 = vpow2.f32 %v1866_v34 }
 0x64f   :  { %v2466_v35 = vpop.eup %2465 }
 0x650   :  { %v1377_v36 = vadd.f32 1.0, %v2466_v35 }
 0x651   :  { %v2468_v38 = vpop.eup %2467 }
 0x652   :  { %2469 = vrcp.f32 %v1377_v36  ;;  %v1384_v5 = vadd.f32 1.0, %v2468_v38  ;;  %v4180_v36 = vld [vmem:[#allocation21_spill] sm:$0xff] }
 0x654   :  { %2471 = vrcp.f32 %v1384_v5  ;;  %v4179_v5 = vld [vmem:[#allocation20_spill] sm:$0xff] }
 0x65f   :  { %v2470_v3 = vpop.eup %2469 }
 0x660   :  { %v1388_v59 = vmul.f32 %v2470_v3, %v1387_v7  ;;  %v1736_v3 = vld [vmem:[%s4084_s5 + $0x70] sm:$0xff] }
 0x661   :  { %v2472_v24 = vpop.eup %2471 }
 0x662   :  { %v1389_v20 = vadd.f32 %v4171_v19, %v1388_v59  ;;  %v1391_v26 = vsub.f32 1.0, %v2472_v24  ;;  %v1393_v29 = vmul.f32 %v2472_v24, %v3760_v39  ;;  %v1737_v59 = vld [vmem:[%s4084_s5 + $0x78] sm:$0xff]  ;;  %v1735_v39 = vld [vmem:[%s4084_s5 + $0x68] sm:$0xff] }
 0x664   :  { %2473 = vtanh.f32 %v1389_v20 }
 0x671   :  { %v2474_v27 = vpop.eup %2473 }
 0x672   :  { %v1392_v28 = vmul.f32 %v2474_v27, %v1391_v26 }
 0x674   :  { %v3916_v31 = vadd.f32 %v1393_v29, %v1392_v28 }
 0x676   :  { %1460 = vmatmul.mubr.f32.vlgmr.msra.gmra.mxu0 %v3916_v31  ;;  %2337 = vmatmul.mubr.f32.vlgmr.msra.gmra.mxu1 %v3916_v31 }
 0x677   :  { %1559 = vmatpush1.msra.mxu0 %v3536_v57  ;;  %2340 = vmatpush3.msra.mxu1 %v3768_v40  ;;  %v4173_v57 = vld [vmem:[#allocation7_spill] sm:$0xff]  ;;  %v1734_v40 = vld [vmem:[%s4084_s5 + $0x60] sm:$0xff] }
 0x678   :  { %1560 = vmatprep.subr.mxu0 %v3543_v45  ;;  %2341 = vmatprep.subr.mxu1 %v4142_v10  ;;  %v4174_v45 = vld [vmem:[#allocation8_spill] sm:$0xff] }
 0x679   :  { %1561 = vmatpush1.msra.mxu0 %v3550_v46  ;;  %2342 = vmatpush3.msra.mxu1 %v3777_v41  ;;  %v4175_v46 = vld [vmem:[#allocation2_spill] sm:$0xff]  ;;  %v1733_v41 = vld [vmem:[%s4084_s5 + $0x58] sm:$0xff] }
 0x67a   :  { %1562 = vmatprep.subr.mxu0 %v3557_v32  ;;  %2343 = vmatprep.subr.mxu1 %v4142_v10 }
 0x67b   :  { %1563 = vmatpush1.msra.mxu0 %v3564_v60  ;;  %2344 = vmatpush3.msra.mxu1 %v3786_v43  ;;  %v1732_v43 = vld [vmem:[%s4084_s5 + $0x50] sm:$0xff] }
 0x67c   :  { %1564 = vmatprep.subr.mxu0 %v3571_v37  ;;  %2345 = vmatprep.subr.mxu1 %v4142_v10  ;;  %v4176_v37 = vld [vmem:[#allocation17_spill] sm:$0xff] }
 0x67d   :  { %1565 = vmatpush1.msra.mxu0 %v3578_v6  ;;  %2346 = vmatpush3.msra.mxu1 %v3795_v44  ;;  %v1731_v44 = vld [vmem:[%s4084_s5 + $0x48] sm:$0xff] }
 0x67e   :  { %1566 = vmatprep.subr.mxu0 %v3585_v42  ;;  %2347 = vmatprep.subr.mxu1 %v4142_v10 }
 0x67f   :  { %1567 = vmatpush1.msra.mxu0 %v3592_v25  ;;  %2348 = vmatpush3.msra.mxu1 %v3804_v23  ;;  %v1730_v23 = vld [vmem:[%s4084_s5 + $0x40] sm:$0xff] }
 0x680   :  { %1568 = vmatprep.subr.mxu0 %v3599_v47  ;;  %2349 = vmatprep.subr.mxu1 %v4142_v10 }
 0x681   :  { %1569 = vmatpush1.msra.mxu0 %v3606_v62  ;;  %2350 = vmatpush3.msra.mxu1 %v3813_v48  ;;  %v4177_v62 = vld [vmem:[#allocation19_spill] sm:$0xff]  ;;  %v1729_v48 = vld [vmem:[%s4084_s5 + $0x38] sm:$0xff] }
 0x682   :  { %1570 = vmatprep.subr.mxu0 %v3613_v49  ;;  %2351 = vmatprep.subr.mxu1 %v4142_v10 }
 0x683   :  { %1571 = vmatpush1.msra.mxu0 %v3620_v14  ;;  %2352 = vmatpush3.msra.mxu1 %v3822_v63  ;;  %v1728_v63 = vld [vmem:[%s4084_s5 + $0x30] sm:$0xff] }
 0x684   :  { %1572 = vmatprep.subr.mxu0 %v3627_v50  ;;  %2353 = vmatprep.subr.mxu1 %v4142_v10 }
 0x685   :  { %1573 = vmatpush1.msra.mxu0 %v3634_v2  ;;  %2354 = vmatpush3.msra.mxu1 %v3831_v0  ;;  %v1727_v0 = vld [vmem:[%s4084_s5 + $0x28] sm:$0xff] }
 0x686   :  { %1574 = vmatprep.subr.mxu0 %v3641_v51  ;;  %2355 = vmatprep.subr.mxu1 %v4142_v10 }
 0x687   :  { %1575 = vmatpush1.msra.mxu0 %v3648_v18  ;;  %2356 = vmatpush3.msra.mxu1 %v3840_v4  ;;  %v1726_v4 = vld [vmem:[%s4084_s5 + $0x20] sm:$0xff] }
 0x688   :  { %1576 = vmatprep.subr.mxu0 %v3655_v52  ;;  %2357 = vmatprep.subr.mxu1 %v4142_v10  ;;  %v3991_v52 = vld [vmem:[%s4083_s3] ss:$0 sm:$0xff] }
 0x689   :  { %1577 = vmatpush1.msra.mxu0 %v3662_v61  ;;  %2358 = vmatpush3.msra.mxu1 %v3849_v8  ;;  %v1725_v8 = vld [vmem:[%s4084_s5 + $0x18] sm:$0xff] }
 0x68a   :  { %1578 = vmatprep.subr.mxu0 %v3669_v53  ;;  %2359 = vmatprep.subr.mxu1 %v4142_v10 }
 0x68b   :  { %1579 = vmatpush1.msra.mxu0 %v3676_v21  ;;  %2360 = vmatpush3.msra.mxu1 %v3858_v12  ;;  %v1724_v12 = vld [vmem:[%s4084_s5 + $0x10] sm:$0xff] }
 0x68c   :  { %1580 = vmatprep.subr.mxu0 %v3683_v54  ;;  %2361 = vmatprep.subr.mxu1 %v4142_v10  ;;  %v4178_v54 = vld [vmem:[#allocation27_spill] sm:$0xff] }
 0x68d   :  { %1581 = vmatpush1.msra.mxu0 %v3690_v16  ;;  %2362 = vmatpush3.msra.mxu1 %v3867_v13  ;;  %v1723_v13 = vld [vmem:[%s4084_s5 + $0x8] sm:$0xff] }
 0x68e   :  { %1582 = vmatprep.subr.mxu0 %v3697_v55  ;;  %2363 = vmatprep.subr.mxu1 %v4142_v10 }
 0x68f   :  { %1583 = vmatpush1.msra.mxu0 %v3704_v30  ;;  %2364 = vmatpush3.msra.mxu1 %v3876_v15  ;;  %v1722_v15 = vld [vmem:[%s4084_s5] sm:$0xff] }
 0x690   :  { %1584 = vmatprep.subr.mxu0 %v3711_v56  ;;  %2365 = vmatprep.subr.mxu1 %v4142_v10 }
 0x691   :  { %1585 = vmatpush1.msra.mxu0 %v3718_v9  ;;  %2366 = vmatpush3.msra.mxu1 %v3885_v17 }
 0x692   :  { %1586 = vmatprep.subr.mxu0 %v3725_v58  ;;  %2367 = vmatprep.subr.mxu1 %v4142_v10 }
 0x693   :  { %1587 = vmatpush1.msra.mxu0 %v3732_v11  ;;  %2368 = vmatpush3.msra.mxu1 %v4172_v1 }
 0x694   :  { %1588 = vmatprep.subr.mxu0 %v4173_v57  ;;  %2369 = vmatprep.subr.mxu1 %v4142_v10 }
 0x695   :  { %1589 = vmatpush1.msra.mxu0 %v4174_v45  ;;  %1622 = vmatprep.mubr.f32.mxu0 %v4142_v10 }
 0x696   :  { %2370 = vmatpush3.msra.mxu1 %v4175_v46  ;;  %2371 = vmatprep.mubr.msk.f32.mxu1 %vm2551_vm0, %v4142_v10 }
 0x697   :  { %2374 = vmatprep.subr.mxu0 %v4142_v10 }
 0x736   :  { %v1461_v32 = vpop.f32.mrf.mxu0  ;;  %v1532_v60 = vpop.f32.mrf.mxu1 }
 0x737   :  { %v1536_v6 = vadd.f32 %v1461_v32, %v4176_v37  ;;  %v1550_v61 = vadd.f32 %v3991_v52, %v1532_v60 }
 0x738   :  { %v2338_v42 = vpop.f32.mrf.mxu1  ;;  %v1463_v47 = vpop.f32.mrf.mxu0 }
 0x739   :  { %v1867_v25 = vmul.f32 -1.442695, %v1536_v6  ;;  %v1543_v49 = vadd.f32 %v1463_v47, %v4177_v62  ;;  %v1871_v6 = vld [vmem:[%s4086_s6] ss:$0 sm:$0xff] }
 0x73b   :  { %2475 = vpow2.f32 %v1867_v25  ;;  %v1868_v14 = vmul.f32 -1.442695, %v1543_v49 }
 0x73d   :  { %2477 = vpow2.f32 %v1868_v14 }
 0x748   :  { %v2476_v50 = vpop.eup %2475 }
 0x749   :  { %v1540_v2 = vadd.f32 1.0, %v2476_v50 }
 0x74a   :  { %v2478_v51 = vpop.eup %2477 }
 0x74b   :  { %2479 = vrcp.f32 %v1540_v2  ;;  %v1547_v18 = vadd.f32 1.0, %v2478_v51 }
 0x74d   :  { %2481 = vrcp.f32 %v1547_v18 }
 0x758   :  { %v2480_v53 = vpop.eup %2479 }
 0x759   :  { %v1551_v21 = vmul.f32 %v2480_v53, %v1550_v61 }
 0x75a   :  { %v2482_v55 = vpop.eup %2481 }
 0x75b   :  { %v1552_v16 = vadd.f32 %v1551_v21, %v4178_v54  ;;  %v1554_v30 = vsub.f32 1.0, %v2482_v55  ;;  %v1556_v58 = vmul.f32 %v2482_v55, %v3916_v31  ;;  %v4181_v31 = vld [vmem:[#allocation26_spill] sm:$0xff] }
 0x75d   :  { %2483 = vtanh.f32 %v1552_v16 }
 0x76a   :  { %v2484_v56 = vpop.eup %2483 }
 0x76b   :  { %v1555_v9 = vmul.f32 %v2484_v56, %v1554_v30 }
 0x76d   :  { %v3996_v11 = vadd.f32 %v1556_v58, %v1555_v9 }
 0x76f   :  { %1623 = vmatmul.mubr.f32.vlgmr.msra.gmra.mxu0 %v3996_v11  ;;  %2372 = vmatmul.mubr.f32.vlgmr.msra.gmra.mxu1 %v3996_v11 }
 0x770   :  { %2406 = vmatprep.mubr.msk.f32.mxu0 %vm2551_vm0, %v4142_v10  ;;  %2375 = vmatpush3.msra.mxu0 %v1737_v59 }
 0x771   :  { %2376 = vmatprep.subr.mxu0 %v4142_v10 }
 0x772   :  { %2377 = vmatpush3.msra.mxu0 %v1736_v3 }
 0x773   :  { %2378 = vmatprep.subr.mxu0 %v4142_v10 }
 0x774   :  { %2379 = vmatpush3.msra.mxu0 %v1735_v39 }
 0x775   :  { %2380 = vmatprep.subr.mxu0 %v4142_v10 }
 0x776   :  { %2381 = vmatpush3.msra.mxu0 %v1734_v40 }
 0x777   :  { %2382 = vmatprep.subr.mxu0 %v4142_v10 }
 0x778   :  { %2383 = vmatpush3.msra.mxu0 %v1733_v41 }
 0x779   :  { %2384 = vmatprep.subr.mxu0 %v4142_v10 }
 0x77a   :  { %2385 = vmatpush3.msra.mxu0 %v1732_v43 }
 0x77b   :  { %2386 = vmatprep.subr.mxu0 %v4142_v10 }
 0x77c   :  { %2387 = vmatpush3.msra.mxu0 %v1731_v44 }
 0x77d   :  { %2388 = vmatprep.subr.mxu0 %v4142_v10 }
 0x77e   :  { %2389 = vmatpush3.msra.mxu0 %v1730_v23 }
 0x77f   :  { %2390 = vmatprep.subr.mxu0 %v4142_v10 }
 0x780   :  { %2391 = vmatpush3.msra.mxu0 %v1729_v48 }
 0x781   :  { %2392 = vmatprep.subr.mxu0 %v4142_v10 }
 0x782   :  { %2393 = vmatpush3.msra.mxu0 %v1728_v63 }
 0x783   :  { %2394 = vmatprep.subr.mxu0 %v4142_v10 }
 0x784   :  { %2395 = vmatpush3.msra.mxu0 %v1727_v0 }
 0x785   :  { %2396 = vmatprep.subr.mxu0 %v4142_v10 }
 0x786   :  { %2397 = vmatpush3.msra.mxu0 %v1726_v4 }
 0x787   :  { %2398 = vmatprep.subr.mxu0 %v4142_v10 }
 0x788   :  { %2399 = vmatpush3.msra.mxu0 %v1725_v8 }
 0x789   :  { %2400 = vmatprep.subr.mxu0 %v4142_v10 }
 0x78a   :  { %2401 = vmatpush3.msra.mxu0 %v1724_v12 }
 0x78b   :  { %2402 = vmatprep.subr.mxu0 %v4142_v10 }
 0x78c   :  { %2403 = vmatpush3.msra.mxu0 %v1723_v13 }
 0x78d   :  { %2404 = vmatprep.subr.mxu0 %v4142_v10 }
 0x78e   :  { %2405 = vmatpush3.msra.mxu0 %v1722_v15 }
 0x82f   :  { %v1624_v17 = vpop.f32.mrf.mxu0  ;;  %v1695_v19 = vpop.f32.mrf.mxu1 }
 0x830   :  { %v1699_v22 = vadd.f32 %v1624_v17, %v4179_v5  ;;  %v1713_v10 = vadd.f32 %v3991_v52, %v1695_v19 }
 0x831   :  { %v2373_v33 = vpop.f32.mrf.mxu1  ;;  %v1626_v35 = vpop.f32.mrf.mxu0 }
 0x832   :  { %v1869_v34 = vmul.f32 -1.442695, %v1699_v22  ;;  %v1706_v38 = vadd.f32 %v1626_v35, %v4180_v36 }
 0x834   :  { %2485 = vpow2.f32 %v1869_v34  ;;  %v1870_v7 = vmul.f32 -1.442695, %v1706_v38 }
 0x836   :  { %2487 = vpow2.f32 %v1870_v7 }
 0x841   :  { %v2486_v20 = vpop.eup %2485 }
 0x842   :  { %v1703_v24 = vadd.f32 1.0, %v2486_v20 }
 0x843   :  { %v2488_v26 = vpop.eup %2487 }
 0x844   :  { %2489 = vrcp.f32 %v1703_v24  ;;  %v1710_v27 = vadd.f32 1.0, %v2488_v26 }
 0x846   :  { %2491 = vrcp.f32 %v1710_v27 }
 0x851   :  { %v2490_v28 = vpop.eup %2489 }
 0x852   :  { %v1714_v29 = vmul.f32 %v2490_v28, %v1713_v10 }
 0x853   :  { %v2492_v57 = vpop.eup %2491 }
 0x854   :  { %v1715_v1 = vadd.f32 %v4181_v31, %v1714_v29  ;;  %v1717_v45 = vsub.f32 1.0, %v2492_v57  ;;  %v1719_v60 = vmul.f32 %v2492_v57, %v3996_v11 }
 0x856   :  { %2493 = vtanh.f32 %v1715_v1 }
 0x863   :  { %v2494_v46 = vpop.eup %2493 }
 0x864   :  { %v1718_v32 = vmul.f32 %v2494_v46, %v1717_v45 }
 0x866   :  { %v1720_v37 = vadd.f32 %v1719_v60, %v1718_v32 }
 0x868   :  { %1721 = vst [vmem:[%s4085_s8] sm:$0xff] %v1720_v37  ;;  %2407 = vmatmul.mubr.f32.vlgmr.msra.gmra.mxu0 %v1720_v37 }
 0x928   :  { %v1811_v42 = vpop.f32.mrf.mxu0 }
 0x929   :  { %v1812_v25 = vadd.f32 %v1871_v6, %v1811_v42 }
 0x92a   :  { %v2408_v47 = vpop.f32.mrf.mxu0 }
 0x92b   :  { %v1872_v62 = vmul.f32 -1.442695, %v1812_v25 }
 0x92d   :  { %2495 = vpow2.f32 %v1872_v62 }
 0x93a   :  { %v2496_v49 = vpop.eup %2495 }
 0x93b   :  { %v1818_v14 = vadd.f32 1.0, %v2496_v49 }
 0x93d   :  { %2497 = vrcp.f32 %v1818_v14 }
 0x94a   :  { %v2498_v50 = vpop.eup %2497 }
 0x94b   :  { %1821 = vst [vmem:[%s4087_s7] sm:$0xff] %v2498_v50 }

</bundles_post_ra>
